<compile_context>
chip_gen: v6e
topology: v6e:2x2x1
jax: 0.10.0
libtpu: 0.0.40
codegen_flags: <defaults>
</compile_context>

<pallas_src>
import functools

import jax
import jax.numpy as jnp
from jax.experimental import pallas as pl
from jax.experimental.pallas import tpu as pltpu

POST_POOLING = 1280   # mobilenet_v2 feature channels
CNN_DENSE = 128
FEAT_DENSE = 64
CAT_DENSE = 64


# ---------------------------------------------------------------------------
# Fused kernel: conv-as-matmul + ReLU + global-avg-pool accumulate + head
# ---------------------------------------------------------------------------
def _fused_kernel(inv_hw,
                  patches_ref, conv_w_ref, feats_ref,
                  cnn_w_ref, cnn_b_ref, feat_w_ref, feat_b_ref,
                  cat_wi_ref, cat_wf_ref, cat_b_ref, out_w_ref, out_b_ref,
                  o_ref, acc_ref):
    m = pl.program_id(1)
    nm = pl.num_programs(1)

    # Zero the pooled-sum accumulator at the start of each batch row.
    @pl.when(m == 0)
    def _():
        acc_ref[...] = jnp.zeros_like(acc_ref)

    # Backbone stand-in: conv tile as matmul on the MXU (bf16 in, f32 acc).
    # conv bias is folded in via a ones column in the patches, so padded rows
    # (all-zero patches incl. the ones column) give relu(0) == 0: no mask and
    # no pool correction are needed.
    x = patches_ref[0]                                        # [tm, KP] bf16
    y = jnp.maximum(
        jnp.dot(x, conv_w_ref[...], preferred_element_type=jnp.float32), 0.0)

    # Fused AdaptiveAvgPool2d((1,1)): running spatial sum in VMEM.
    acc_ref[...] += jnp.sum(y, axis=0, keepdims=True)         # [1, 1280] f32

    # On the last M tile of this batch row, run the whole head.
    @pl.when(m == nm - 1)
    def _():
        pooled = (acc_ref[...] * inv_hw).astype(jnp.bfloat16)       # [1, 1280]

        img = jnp.dot(pooled, cnn_w_ref[...],
                      preferred_element_type=jnp.float32)
        img = jnp.maximum(img + cnn_b_ref[...], 0.0)                # relu(cnn_dense)

        ft = jnp.dot(feats_ref[0], feat_w_ref[...],
                     preferred_element_type=jnp.float32)
        ft = jnp.maximum(ft + feat_b_ref[...], 0.0)                 # relu(dense)

        # cat([img, ft]) @ W_cat == img @ W_cat[:128] + ft @ W_cat[128:]
        comb = (jnp.dot(img.astype(jnp.bfloat16), cat_wi_ref[...],
                        preferred_element_type=jnp.float32)
                + jnp.dot(ft.astype(jnp.bfloat16), cat_wf_ref[...],
                          preferred_element_type=jnp.float32)
                + cat_b_ref[...])
        comb = jnp.maximum(comb, 0.0)                               # relu(concat_dense)

        o_ref[0] = (jnp.dot(comb.astype(jnp.bfloat16), out_w_ref[...],
                            preferred_element_type=jnp.float32)
                    + out_b_ref[...])                               # output_layer


# ---------------------------------------------------------------------------
# im2col patch extraction (pure reshape/slice plumbing, plain JAX)
# ---------------------------------------------------------------------------
def _im2col(x_nhwc, k=3, stride=2, pad=1, *, append_ones=False, k_pad_to=None):
    """k x k / stride patches.  Optionally appends a ones column (bias folding)
    and zero-pads the tap axis to `k_pad_to` inside the single concatenate, so
    the patch tensor is materialized exactly once in the input dtype."""
    B, H, W, C = x_nhwc.shape
    dt = x_nhwc.dtype
    xp = jnp.pad(x_nhwc, ((0, 0), (pad, pad), (pad, pad), (0, 0)))
    Ho = (H + 2 * pad - k) // stride + 1
    Wo = (W + 2 * pad - k) // stride + 1
    cols = []
    for dy in range(k):
        for dx in range(k):
            cols.append(xp[:, dy:dy + stride * Ho:stride, dx:dx + stride * Wo:stride, :])
    K = k * k * C
    if append_ones:
        cols.append(jnp.ones((B, Ho, Wo, 1), dt))
        K += 1
    if k_pad_to is not None and k_pad_to > K:
        cols.append(jnp.zeros((B, Ho, Wo, k_pad_to - K), dt))
        K = k_pad_to
    patches = jnp.concatenate(cols, axis=-1)                  # [B, Ho, Wo, K]
    return patches.reshape(B, Ho * Wo, K), Ho, Wo


# ---------------------------------------------------------------------------
# Parameter construction (deterministic, synthetic)
# ---------------------------------------------------------------------------
def init_params(key, num_predictions, num_features, in_channels=3, k=3):
    keys = jax.random.split(key, 10)
    s = 0.05
    return {
        "conv_w": s * jax.random.normal(keys[0], (k * k * in_channels, POST_POOLING), jnp.float32),
        "conv_b": s * jax.random.normal(keys[1], (1, POST_POOLING), jnp.float32),
        "cnn_w":  s * jax.random.normal(keys[2], (POST_POOLING, CNN_DENSE), jnp.float32),
        "cnn_b":  s * jax.random.normal(keys[3], (1, CNN_DENSE), jnp.float32),
        "feat_w": s * jax.random.normal(keys[4], (num_features, FEAT_DENSE), jnp.float32),
        "feat_b": s * jax.random.normal(keys[5], (1, FEAT_DENSE), jnp.float32),
        "cat_w":  s * jax.random.normal(keys[6], (CNN_DENSE + FEAT_DENSE, CAT_DENSE), jnp.float32),
        "cat_b":  s * jax.random.normal(keys[7], (1, CAT_DENSE), jnp.float32),
        "out_w":  s * jax.random.normal(keys[8], (CAT_DENSE, num_predictions), jnp.float32),
        "out_b":  s * jax.random.normal(keys[9], (1, num_predictions), jnp.float32),
    }


# ---------------------------------------------------------------------------
# Per-generation tile / VMEM budget (v7x has only 64 MiB per TensorCore)
# ---------------------------------------------------------------------------
def _per_generation_tiling():
    """Returns (tm_max, vmem_limit_bytes); conservative fallback = v7x budget."""
    try:
        cap = pltpu.get_tpu_info().vmem_capacity_bytes
    except Exception:
        cap = 64 * 1024 * 1024
    if cap >= 96 * 1024 * 1024:          # v5e / v6e: 128 MiB physical VMEM
        return 4096, 64 * 1024 * 1024
    return 2048, 40 * 1024 * 1024        # v7x: 64 MiB per TensorCore


# ---------------------------------------------------------------------------
# Forward pass (single fused pallas_call)
# ---------------------------------------------------------------------------
def plant_cnn_forward(params, img_nchw, feats, *, tm_max=None):
    k, stride, pad = 3, 2, 1
    B, C = img_nchw.shape[0], img_nchw.shape[1]
    P = params["out_w"].shape[1]
    F = feats.shape[1]

    gen_tm_max, vmem_limit = _per_generation_tiling()
    if tm_max is None:
        tm_max = gen_tm_max

    K = k * k * C + 1                                # +1: ones column (folded bias)
    KP = ((K + 31) // 32) * 32                       # lane-align taps (28 -> 32)

    # NCHW -> NHWC in bf16, then im2col with ones column + K pad fused into one
    # concatenate (single bf16 materialization of the patch tensor).
    x = jnp.transpose(img_nchw.astype(jnp.bfloat16), (0, 2, 3, 1))
    patches, Ho, Wo = _im2col(x, k=k, stride=stride, pad=pad,
                              append_ones=True, k_pad_to=KP)   # [B, hw, KP] bf16
    hw = Ho * Wo

    # M tiling: multiple of 8, capped per-generation; tiles never straddle a
    # batch boundary because batch is its own grid axis.
    tm = min(tm_max, ((hw + 7) // 8) * 8)
    m_pad = pl.cdiv(hw, tm) * tm
    n_m = m_pad // tm
    if m_pad != hw:
        # Padded rows are all-zero (incl. the ones column) -> relu(conv) == 0,
        # so they contribute nothing to the pool: no in-kernel mask needed.
        patches = jnp.pad(patches, ((0, 0), (0, m_pad - hw), (0, 0)))

    # conv bias folded in as an extra (ones-column) row of conv_w.
    conv_w = jnp.concatenate([params["conv_w"], params["conv_b"]], axis=0)
    conv_w = jnp.pad(conv_w, ((0, KP - K), (0, 0))).astype(jnp.bfloat16)

    cnn_w = params["cnn_w"].astype(jnp.bfloat16)
    feat_w = params["feat_w"].astype(jnp.bfloat16)
    cat_wi = params["cat_w"][:CNN_DENSE, :].astype(jnp.bfloat16)
    cat_wf = params["cat_w"][CNN_DENSE:, :].astype(jnp.bfloat16)
    feats3 = feats.astype(jnp.bfloat16).reshape(B, 1, F)

    # Lane-dense output: pad prediction dim to 128 for unmasked stores.
    PP = ((P + 127) // 128) * 128
    out_w = jnp.pad(params["out_w"], ((0, 0), (0, PP - P))).astype(jnp.bfloat16)
    out_b = jnp.pad(params["out_b"], ((0, 0), (0, PP - P)))

    kernel = functools.partial(_fused_kernel, 1.0 / hw)

    grid_spec = pltpu.PrefetchScalarGridSpec(
        num_scalar_prefetch=0,
        grid=(B, n_m),
        in_specs=[
            pl.BlockSpec((1, tm, KP), lambda b, m: (b, m, 0)),             # patches
            pl.BlockSpec((KP, POST_POOLING), lambda b, m: (0, 0)),         # conv_w (+bias row)
            pl.BlockSpec((1, 1, F), lambda b, m: (b, 0, 0)),               # feats
            pl.BlockSpec((POST_POOLING, CNN_DENSE), lambda b, m: (0, 0)),  # cnn_w
            pl.BlockSpec((1, CNN_DENSE), lambda b, m: (0, 0)),             # cnn_b
            pl.BlockSpec((F, FEAT_DENSE), lambda b, m: (0, 0)),            # feat_w
            pl.BlockSpec((1, FEAT_DENSE), lambda b, m: (0, 0)),            # feat_b
            pl.BlockSpec((CNN_DENSE, CAT_DENSE), lambda b, m: (0, 0)),     # cat_w[:128]
            pl.BlockSpec((FEAT_DENSE, CAT_DENSE), lambda b, m: (0, 0)),    # cat_w[128:]
            pl.BlockSpec((1, CAT_DENSE), lambda b, m: (0, 0)),             # cat_b
            pl.BlockSpec((CAT_DENSE, PP), lambda b, m: (0, 0)),            # out_w (padded)
            pl.BlockSpec((1, PP), lambda b, m: (0, 0)),                    # out_b (padded)
        ],
        out_specs=pl.BlockSpec((1, 1, PP), lambda b, m: (b, 0, 0)),
        scratch_shapes=[pltpu.VMEM((1, POST_POOLING), jnp.float32)],       # pooled-sum acc
    )

    # TODO(synk): on v7x with B == 1 one TensorCore idles (only B is "parallel");
    # a size-2 core split of the M reduction with two partial accumulators
    # would recover it.  Not needed for B >= 2.
    out = pl.pallas_call(
        kernel,
        out_shape=jax.ShapeDtypeStruct((B, 1, PP), jnp.float32),
        grid_spec=grid_spec,
        compiler_params=pltpu.CompilerParams(
            dimension_semantics=("parallel", "arbitrary"),
            vmem_limit_bytes=vmem_limit,
        ),
    )(patches, conv_w, feats3,
      cnn_w, params["cnn_b"], feat_w, params["feat_b"],
      cat_wi, cat_wf, params["cat_b"],
      out_w, out_b)
    return out.reshape(B, PP)[:, :P]


# ---------------------------------------------------------------------------
# Pure-JAX f32 reference (same math, no Pallas) for a sanity check
# ---------------------------------------------------------------------------
def _reference_forward(params, img_nchw, feats):
    x = jnp.transpose(img_nchw, (0, 2, 3, 1)).astype(jnp.float32)
    patches, _, _ = _im2col(x, k=3, stride=2, pad=1)            # [B, hw, 27] f32
    fmap = jnp.maximum(patches @ params["conv_w"] + params["conv_b"], 0.0)
    pooled = jnp.mean(fmap, axis=1)                             # [B, 1280]
    img = jnp.maximum(pooled @ params["cnn_w"] + params["cnn_b"], 0.0)
    ft = jnp.maximum(feats.astype(jnp.float32) @ params["feat_w"] + params["feat_b"], 0.0)
    comb = jnp.maximum(jnp.concatenate([img, ft], axis=1) @ params["cat_w"]
                       + params["cat_b"], 0.0)
    return comb @ params["out_w"] + params["out_b"]


if __name__ == "__main__":
    NUM_PREDICTIONS = 6
    NUM_FEATURES = 32
    B, C, H, W = 2, 3, 16, 16

    root = jax.random.PRNGKey(0)
    k_img, k_feat, k_params = jax.random.split(root, 3)

    img = jax.random.normal(k_img, (B, C, H, W), jnp.float32)
    feats = jax.random.normal(k_feat, (B, NUM_FEATURES), jnp.float32)
    params = init_params(k_params, NUM_PREDICTIONS, NUM_FEATURES, in_channels=C)

    fwd = jax.jit(plant_cnn_forward)
    out = jax.block_until_ready(fwd(params, img, feats))

    assert out.shape == (B, NUM_PREDICTIONS), out.shape
    assert jnp.all(jnp.isfinite(out))

    ref = _reference_forward(params, img, feats)
    assert jnp.allclose(out, ref, rtol=5e-2, atol=5e-2), jnp.max(jnp.abs(out - ref))

    print("KERNEL_OK")
</pallas_src>

<mosaic_0001>
module attributes {stable_mosaic.version = 11 : i64} {
  func.func @_fused_kernel(%arg0: i32, %arg1: i32, %arg2: memref<1x64x32xbf16, #tpu.memory_space<vmem>>, %arg3: memref<32x1280xbf16, #tpu.memory_space<vmem>>, %arg4: memref<1x1x32xbf16, #tpu.memory_space<vmem>>, %arg5: memref<1280x128xbf16, #tpu.memory_space<vmem>>, %arg6: memref<1x128xf32, #tpu.memory_space<vmem>>, %arg7: memref<32x64xbf16, #tpu.memory_space<vmem>>, %arg8: memref<1x64xf32, #tpu.memory_space<vmem>>, %arg9: memref<128x64xbf16, #tpu.memory_space<vmem>>, %arg10: memref<64x64xbf16, #tpu.memory_space<vmem>>, %arg11: memref<1x64xf32, #tpu.memory_space<vmem>>, %arg12: memref<64x128xbf16, #tpu.memory_space<vmem>>, %arg13: memref<1x128xf32, #tpu.memory_space<vmem>>, %arg14: memref<1x1x128xf32, #tpu.memory_space<vmem>>, %arg15: memref<1x1280xf32, #tpu.memory_space<vmem>>) attributes {dimension_semantics = [#tpu.dimension_semantics<parallel>, #tpu.dimension_semantics<arbitrary>], iteration_bounds = array<i64: 2, 1>, scalar_prefetch = 0 : i64, scratch_operands = 1 : i64, tpu.core_type = #tpu.core_type<tc>, window_params = [{transform_indices = @transform_0, window_bounds = array<i64: 1, 64, 32>}, {pipeline_mode = #tpu.pipeline_mode<synchronous>, transform_indices = @transform_1, window_bounds = array<i64: 32, 1280>}, {transform_indices = @transform_2, window_bounds = array<i64: 1, 1, 32>}, {pipeline_mode = #tpu.pipeline_mode<synchronous>, transform_indices = @transform_3, window_bounds = array<i64: 1280, 128>}, {pipeline_mode = #tpu.pipeline_mode<synchronous>, transform_indices = @transform_4, window_bounds = array<i64: 1, 128>}, {pipeline_mode = #tpu.pipeline_mode<synchronous>, transform_indices = @transform_5, window_bounds = array<i64: 32, 64>}, {pipeline_mode = #tpu.pipeline_mode<synchronous>, transform_indices = @transform_6, window_bounds = array<i64: 1, 64>}, {pipeline_mode = #tpu.pipeline_mode<synchronous>, transform_indices = @transform_7, window_bounds = array<i64: 128, 64>}, {pipeline_mode = #tpu.pipeline_mode<synchronous>, transform_indices = @transform_8, window_bounds = array<i64: 64, 64>}, {pipeline_mode = #tpu.pipeline_mode<synchronous>, transform_indices = @transform_9, window_bounds = array<i64: 1, 64>}, {pipeline_mode = #tpu.pipeline_mode<synchronous>, transform_indices = @transform_10, window_bounds = array<i64: 64, 128>}, {pipeline_mode = #tpu.pipeline_mode<synchronous>, transform_indices = @transform_11, window_bounds = array<i64: 1, 128>}, {transform_indices = @transform_12, window_bounds = array<i64: 1, 1, 128>}]} {
    %c0_i32 = arith.constant 0 : i32
    %0 = arith.cmpi eq, %arg1, %c0_i32 : i32
    %1 = arith.extui %0 : i1 to i32
    %c0_i32_0 = arith.constant 0 : i32
    %2 = arith.cmpi ne, %1, %c0_i32_0 : i32
    scf.if %2 {
      %cst_13 = arith.constant 0.000000e+00 : f32
      %17 = vector.broadcast %cst_13 : f32 to vector<1x1280xf32>
      %c0_14 = arith.constant 0 : index
      %c0_15 = arith.constant 0 : index
      %18 = vector.load %arg15[%c0_14, %c0_15] : memref<1x1280xf32, #tpu.memory_space<vmem>>, vector<1x1280xf32>
      tpu.vector_store %arg15[%c0_14, %c0_15], %17 {strides = array<i32>} : memref<1x1280xf32, #tpu.memory_space<vmem>>, vector<1x1280xf32>,
    } else {
    }
    %c0 = arith.constant 0 : index
    %c0_1 = arith.constant 0 : index
    %c0_2 = arith.constant 0 : index
    %3 = vector.load %arg2[%c0, %c0_1, %c0_2] : memref<1x64x32xbf16, #tpu.memory_space<vmem>>, vector<1x64x32xbf16>
    %4 = vector.shape_cast %3 : vector<1x64x32xbf16> to vector<64x32xbf16>
    %c0_3 = arith.constant 0 : index
    %c0_4 = arith.constant 0 : index
    %5 = vector.load %arg3[%c0_3, %c0_4] : memref<32x1280xbf16, #tpu.memory_space<vmem>>, vector<32x1280xbf16>
    %cst = arith.constant dense<0.000000e+00> : vector<64x1280xf32>
    %6 = tpu.matmul %4, %5, %cst {dimension_numbers = #tpu.dot_dimension_numbers<[1], [0], [0], [1], [0, 0, 1, 1], [], []>} : vector<64x32xbf16>, vector<32x1280xbf16>, vector<64x1280xf32> -> vector<64x1280xf32>
    %cst_5 = arith.constant 0.000000e+00 : f32
    %7 = vector.broadcast %cst_5 : f32 to vector<64x1280xf32>
    %8 = arith.maximumf %6, %7 : vector<64x1280xf32>
    %c0_6 = arith.constant 0 : index
    %c0_7 = arith.constant 0 : index
    %9 = vector.load %arg15[%c0_6, %c0_7] : memref<1x1280xf32, #tpu.memory_space<vmem>>, vector<1x1280xf32>
    %cst_8 = arith.constant dense<0.000000e+00> : vector<1280xf32>
    %10 = vector.multi_reduction <add>, %8, %cst_8 [0] : vector<64x1280xf32> to vector<1280xf32>
    %11 = vector.shape_cast %10 : vector<1280xf32> to vector<1x1280xf32>
    %12 = arith.addf %9, %11 : vector<1x1280xf32>
    %c0_9 = arith.constant 0 : index
    %c0_10 = arith.constant 0 : index
    %13 = vector.load %arg15[%c0_9, %c0_10] : memref<1x1280xf32, #tpu.memory_space<vmem>>, vector<1x1280xf32>
    tpu.vector_store %arg15[%c0_9, %c0_10], %12 {strides = array<i32>} : memref<1x1280xf32, #tpu.memory_space<vmem>>, vector<1x1280xf32>,
    %c0_i32_11 = arith.constant 0 : i32
    %14 = arith.cmpi eq, %arg1, %c0_i32_11 : i32
    %15 = arith.extui %14 : i1 to i32
    %c0_i32_12 = arith.constant 0 : i32
    %16 = arith.cmpi ne, %15, %c0_i32_12 : i32
    scf.if %16 {
      %c0_13 = arith.constant 0 : index
      %c0_14 = arith.constant 0 : index
      %17 = vector.load %arg15[%c0_13, %c0_14] : memref<1x1280xf32, #tpu.memory_space<vmem>>, vector<1x1280xf32>
      %cst_15 = arith.constant 1.562500e-02 : f32
      %18 = vector.broadcast %cst_15 : f32 to vector<1x1280xf32>
      %19 = arith.mulf %17, %18 : vector<1x1280xf32>
      %20 = arith.truncf %19 : vector<1x1280xf32> to vector<1x1280xbf16>
      %c0_16 = arith.constant 0 : index
      %c0_17 = arith.constant 0 : index
      %21 = vector.load %arg5[%c0_16, %c0_17] : memref<1280x128xbf16, #tpu.memory_space<vmem>>, vector<1280x128xbf16>
      %cst_18 = arith.constant dense<0.000000e+00> : vector<1x128xf32>
      %22 = tpu.matmul %20, %21, %cst_18 {dimension_numbers = #tpu.dot_dimension_numbers<[1], [0], [0], [1], [0, 0, 1, 1], [], []>} : vector<1x1280xbf16>, vector<1280x128xbf16>, vector<1x128xf32> -> vector<1x128xf32>
      %c0_19 = arith.constant 0 : index
      %c0_20 = arith.constant 0 : index
      %23 = vector.load %arg6[%c0_19, %c0_20] : memref<1x128xf32, #tpu.memory_space<vmem>>, vector<1x128xf32>
      %24 = arith.addf %22, %23 : vector<1x128xf32>
      %cst_21 = arith.constant 0.000000e+00 : f32
      %25 = vector.broadcast %cst_21 : f32 to vector<1x128xf32>
      %26 = arith.maximumf %24, %25 : vector<1x128xf32>
      %c0_22 = arith.constant 0 : index
      %c0_23 = arith.constant 0 : index
      %c0_24 = arith.constant 0 : index
      %27 = vector.load %arg4[%c0_22, %c0_23, %c0_24] : memref<1x1x32xbf16, #tpu.memory_space<vmem>>, vector<1x1x32xbf16>
      %28 = vector.shape_cast %27 : vector<1x1x32xbf16> to vector<1x32xbf16>
      %c0_25 = arith.constant 0 : index
      %c0_26 = arith.constant 0 : index
      %29 = vector.load %arg7[%c0_25, %c0_26] : memref<32x64xbf16, #tpu.memory_space<vmem>>, vector<32x64xbf16>
      %cst_27 = arith.constant dense<0.000000e+00> : vector<1x64xf32>
      %30 = tpu.matmul %28, %29, %cst_27 {dimension_numbers = #tpu.dot_dimension_numbers<[1], [0], [0], [1], [0, 0, 1, 1], [], []>} : vector<1x32xbf16>, vector<32x64xbf16>, vector<1x64xf32> -> vector<1x64xf32>
      %c0_28 = arith.constant 0 : index
      %c0_29 = arith.constant 0 : index
      %31 = vector.load %arg8[%c0_28, %c0_29] : memref<1x64xf32, #tpu.memory_space<vmem>>, vector<1x64xf32>
      %32 = arith.addf %30, %31 : vector<1x64xf32>
      %cst_30 = arith.constant 0.000000e+00 : f32
      %33 = vector.broadcast %cst_30 : f32 to vector<1x64xf32>
      %34 = arith.maximumf %32, %33 : vector<1x64xf32>
      %35 = arith.truncf %26 : vector<1x128xf32> to vector<1x128xbf16>
      %c0_31 = arith.constant 0 : index
      %c0_32 = arith.constant 0 : index
      %36 = vector.load %arg9[%c0_31, %c0_32] : memref<128x64xbf16, #tpu.memory_space<vmem>>, vector<128x64xbf16>
      %cst_33 = arith.constant dense<0.000000e+00> : vector<1x64xf32>
      %37 = tpu.matmul %35, %36, %cst_33 {dimension_numbers = #tpu.dot_dimension_numbers<[1], [0], [0], [1], [0, 0, 1, 1], [], []>} : vector<1x128xbf16>, vector<128x64xbf16>, vector<1x64xf32> -> vector<1x64xf32>
      %38 = arith.truncf %34 : vector<1x64xf32> to vector<1x64xbf16>
      %c0_34 = arith.constant 0 : index
      %c0_35 = arith.constant 0 : index
      %39 = vector.load %arg10[%c0_34, %c0_35] : memref<64x64xbf16, #tpu.memory_space<vmem>>, vector<64x64xbf16>
      %cst_36 = arith.constant dense<0.000000e+00> : vector<1x64xf32>
      %40 = tpu.matmul %38, %39, %cst_36 {dimension_numbers = #tpu.dot_dimension_numbers<[1], [0], [0], [1], [0, 0, 1, 1], [], []>} : vector<1x64xbf16>, vector<64x64xbf16>, vector<1x64xf32> -> vector<1x64xf32>
      %41 = arith.addf %37, %40 : vector<1x64xf32>
      %c0_37 = arith.constant 0 : index
      %c0_38 = arith.constant 0 : index
      %42 = vector.load %arg11[%c0_37, %c0_38] : memref<1x64xf32, #tpu.memory_space<vmem>>, vector<1x64xf32>
      %43 = arith.addf %41, %42 : vector<1x64xf32>
      %cst_39 = arith.constant 0.000000e+00 : f32
      %44 = vector.broadcast %cst_39 : f32 to vector<1x64xf32>
      %45 = arith.maximumf %43, %44 : vector<1x64xf32>
      %46 = arith.truncf %45 : vector<1x64xf32> to vector<1x64xbf16>
      %c0_40 = arith.constant 0 : index
      %c0_41 = arith.constant 0 : index
      %47 = vector.load %arg12[%c0_40, %c0_41] : memref<64x128xbf16, #tpu.memory_space<vmem>>, vector<64x128xbf16>
      %cst_42 = arith.constant dense<0.000000e+00> : vector<1x128xf32>
      %48 = tpu.matmul %46, %47, %cst_42 {dimension_numbers = #tpu.dot_dimension_numbers<[1], [0], [0], [1], [0, 0, 1, 1], [], []>} : vector<1x64xbf16>, vector<64x128xbf16>, vector<1x128xf32> -> vector<1x128xf32>
      %c0_43 = arith.constant 0 : index
      %c0_44 = arith.constant 0 : index
      %49 = vector.load %arg13[%c0_43, %c0_44] : memref<1x128xf32, #tpu.memory_space<vmem>>, vector<1x128xf32>
      %50 = arith.addf %48, %49 : vector<1x128xf32>
      %c0_45 = arith.constant 0 : index
      %c0_46 = arith.constant 0 : index
      %c0_47 = arith.constant 0 : index
      %51 = vector.load %arg14[%c0_45, %c0_46, %c0_47] : memref<1x1x128xf32, #tpu.memory_space<vmem>>, vector<1x1x128xf32>
      %52 = vector.shape_cast %51 : vector<1x1x128xf32> to vector<1x128xf32>
      %53 = vector.shape_cast %50 : vector<1x128xf32> to vector<1x1x128xf32>
      tpu.vector_store %arg14[%c0_45, %c0_46, %c0_47], %53 {strides = array<i32>} : memref<1x1x128xf32, #tpu.memory_space<vmem>>, vector<1x1x128xf32>,
    } else {
    }
    return
  }
  func.func @transform_0(%arg0: i32, %arg1: i32) -> (i32, i32, i32) {
    %c0_i32 = arith.constant 0 : i32
    %c0_i32_0 = arith.constant 0 : i32
    return %arg0, %arg1, %c0_i32 : i32, i32, i32
  }
  func.func @transform_1(%arg0: i32, %arg1: i32) -> (i32, i32) {
    %c0_i32 = arith.constant 0 : i32
    %c0_i32_0 = arith.constant 0 : i32
    %c0_i32_1 = arith.constant 0 : i32
    return %c0_i32, %c0_i32_0 : i32, i32
  }
  func.func @transform_2(%arg0: i32, %arg1: i32) -> (i32, i32, i32) {
    %c0_i32 = arith.constant 0 : i32
    %c0_i32_0 = arith.constant 0 : i32
    %c0_i32_1 = arith.constant 0 : i32
    return %arg0, %c0_i32, %c0_i32_0 : i32, i32, i32
  }
  func.func @transform_3(%arg0: i32, %arg1: i32) -> (i32, i32) {
    %c0_i32 = arith.constant 0 : i32
    %c0_i32_0 = arith.constant 0 : i32
    %c0_i32_1 = arith.constant 0 : i32
    return %c0_i32, %c0_i32_0 : i32, i32
  }
  func.func @transform_4(%arg0: i32, %arg1: i32) -> (i32, i32) {
    %c0_i32 = arith.constant 0 : i32
    %c0_i32_0 = arith.constant 0 : i32
    %c0_i32_1 = arith.constant 0 : i32
    return %c0_i32, %c0_i32_0 : i32, i32
  }
  func.func @transform_5(%arg0: i32, %arg1: i32) -> (i32, i32) {
    %c0_i32 = arith.constant 0 : i32
    %c0_i32_0 = arith.constant 0 : i32
    %c0_i32_1 = arith.constant 0 : i32
    return %c0_i32, %c0_i32_0 : i32, i32
  }
  func.func @transform_6(%arg0: i32, %arg1: i32) -> (i32, i32) {
    %c0_i32 = arith.constant 0 : i32
    %c0_i32_0 = arith.constant 0 : i32
    %c0_i32_1 = arith.constant 0 : i32
    return %c0_i32, %c0_i32_0 : i32, i32
  }
  func.func @transform_7(%arg0: i32, %arg1: i32) -> (i32, i32) {
    %c0_i32 = arith.constant 0 : i32
    %c0_i32_0 = arith.constant 0 : i32
    %c0_i32_1 = arith.constant 0 : i32
    return %c0_i32, %c0_i32_0 : i32, i32
  }
  func.func @transform_8(%arg0: i32, %arg1: i32) -> (i32, i32) {
    %c0_i32 = arith.constant 0 : i32
    %c0_i32_0 = arith.constant 0 : i32
    %c0_i32_1 = arith.constant 0 : i32
    return %c0_i32, %c0_i32_0 : i32, i32
  }
  func.func @transform_9(%arg0: i32, %arg1: i32) -> (i32, i32) {
    %c0_i32 = arith.constant 0 : i32
    %c0_i32_0 = arith.constant 0 : i32
    %c0_i32_1 = arith.constant 0 : i32
    return %c0_i32, %c0_i32_0 : i32, i32
  }
  func.func @transform_10(%arg0: i32, %arg1: i32) -> (i32, i32) {
    %c0_i32 = arith.constant 0 : i32
    %c0_i32_0 = arith.constant 0 : i32
    %c0_i32_1 = arith.constant 0 : i32
    return %c0_i32, %c0_i32_0 : i32, i32
  }
  func.func @transform_11(%arg0: i32, %arg1: i32) -> (i32, i32) {
    %c0_i32 = arith.constant 0 : i32
    %c0_i32_0 = arith.constant 0 : i32
    %c0_i32_1 = arith.constant 0 : i32
    return %c0_i32, %c0_i32_0 : i32, i32
  }
  func.func @transform_12(%arg0: i32, %arg1: i32) -> (i32, i32, i32) {
    %c0_i32 = arith.constant 0 : i32
    %c0_i32_0 = arith.constant 0 : i32
    %c0_i32_1 = arith.constant 0 : i32
    return %arg0, %c0_i32, %c0_i32_0 : i32, i32, i32
  }
}

</mosaic_0001>

<bundles_post_ra>
// kernel: plant_cnn_forward.1
= control target key start
LH: loop header
LB: loop body
LE: loop exit
PB: predicated region body
PF: predicated region fallthrough
CT: control target
= control target key end

     0   :  { %17 = vsyncpa [#allocation4], 0  ;;  %s3925_s0 = inlined_call_operand.vmem [shape: bf16[2,64,32], index: 0, kind: input, shape index: {}]   ;;  %s3926_s1 = inlined_call_operand.vmem [shape: bf16[32,1280], index: 1, kind: input, shape index: {}]   ;;  %s3927_s2 = inlined_call_operand.vmem [shape: bf16[2,1,32], index: 2, kind: input, shape index: {}]   ;;  %s3928_s3 = inlined_call_operand.vmem [shape: bf16[1280,128], index: 3, kind: input, shape index: {}]   ;;  %s3929_s4 = inlined_call_operand.vmem [shape: f32[1,128], index: 4, kind: input, shape index: {}]   ;;  %s3930_s5 = inlined_call_operand.vmem [shape: bf16[32,64], index: 5, kind: input, shape index: {}]   ;;  %s3931_s6 = inlined_call_operand.vmem [shape: f32[1,64], index: 6, kind: input, shape index: {}]   ;;  %s3932_s7 = inlined_call_operand.vmem [shape: bf16[128,64], index: 7, kind: input, shape index: {}]   ;;  %s3933_s8 = inlined_call_operand.vmem [shape: bf16[64,64], index: 8, kind: input, shape index: {}]   ;;  %s3934_s9 = inlined_call_operand.vmem [shape: f32[1,64], index: 9, kind: input, shape index: {}]   ;;  %s3935_s10 = inlined_call_operand.vmem [shape: bf16[64,128], index: 10, kind: input, shape index: {}]   ;;  %s3936_s11 = inlined_call_operand.vmem [shape: f32[1,128], index: 11, kind: input, shape index: {}]   ;;  %s3937_s12 = inlined_call_operand.hbm [shape: f32[2,1,128], index: 12, kind: output, shape index: {}]  }
   0x1   :  { %19 = vsyncpa [#allocation4 + $0x1], 0  ;;  %s3292_s21 = smov 0   ;;  %s3294_s22 = smov 0  }
   0x2   :  { %s3296_s23 = smov 0   ;;  %s3298_s24 = smov 0  }
   0x3   :  { %s3300_s25 = smov 0   ;;  %s3302_s26 = smov 0  }
   0x4 LB: > { %3941 = sst [smem:[#allocation6_spill]] %s3208_s23  ;;  %s2613_s27 = sadd.s32 4294967295, %s3220_s26   ;;  %s3220_s26 = sphi %s3302_s26, %s25_s26   ;;  %s3216_s25 = sphi %s3300_s25, %s3952_s25   ;;  %s3212_s24 = sphi %s3298_s24, %s3951_s24   ;;  %s3208_s23 = sphi %s3296_s23, %s3950_s23   ;;  %s3204_s22 = sphi %s3294_s22, %s3954_s22   ;;  %s3200_s21 = sphi %s3292_s21, %s3953_s21  }
   0x5   : > { %3942 = sst [smem:[#allocation7_spill]] %s3216_s25  ;;  %s2614_s28 = sadd.s32 4294967294, %s3220_s26  }
   0x6   : > { %s37_s29 = sadd.s32 1, %s3216_s25  ;;  %s308_s30 = sadd.s32 1, %s3208_s23 }
   0x7   : > { %p39_p0 = scmp.ge.s32.totalorder %s37_s29, 2  ;;  %p318_p1 = scmp.ne.s32.totalorder %s3208_s23, %s3204_s22 }
   0x8   : > { %p319_p2 = scmp.eq.s32.totalorder %s2613_s27, 1  ;;  %p324_p3 = scmp.ne.s32.totalorder %s3204_s22, %s3200_s21 }
   0x9   : > { %s3956_s29 = smov (%p39_p0, %s37_s29), 0  ;;  %p325_p5 = scmp.eq.s32.totalorder %s2614_s28, 1 }
   0xa   : > { %3943 = sst [smem:[#allocation8_spill]] %s3956_s29  ;;  %p3332_p4 = por %p319_p2, %p318_p1 }
   0xb   : > { %s305_s14 = ssub.s32 %s3216_s25, %s3956_s29  ;;  %p2617_p6 = scmp.ge.s32.totalorder %s3220_s26, 1 }
   0xc   : > { %p306_p7 = scmp.eq.s32.totalorder %s305_s14, 0  ;;  %p3339_p8 = por %p325_p5, %p324_p3 }
   0xd   : > { %p392_p9 = scmp.lt.s32.totalorder %s3220_s26, 3 }
   0xe   : > { %s3345_s16 = scalar_select %p306_p7, %s3208_s23, %s308_s30  }
   0xf   : > { %p393_p10 = pnand %p2617_p6, %p392_p9 }
  0x10   : > { %3946 = sst [smem:[#allocation9_spill]] %s3345_s16  ;;  %p441_p11 = scmp.lt.s32.totalorder (!%p393_p10), %s3212_s24, 1 }
  0x11   : > { %396 = sbr.rel (%p393_p10) target bundleno = 997 (0x3e5), region = 68  ;;  %s438_s28 = sand.u32 (!%p393_p10), 1, %s3204_s22  }
  0x12   : > { %s2523_s20 = scalar_lea.sflag (!%p393_p10), [#allocation4], %s438_s28 }
  0x16   : > { %v3012_v0 = vld [vmem:[%s3926_s1 + $0x54] ss:$40 sps:$4 sm:$0xff]   ;;  %v3222_v2 = vmov 0   ;;  %v3016_v3 = vld [vmem:[%s3926_s1 + $0x50] ss:$40 sps:$4 sm:$0xff]   ;;  %s3363_s17 = scalar_select %p441_p11, %s3212_s24, 1  ;;  %v459_v59 = vlaneseq }
  0x17   : > { %v3014_v1 = vld [vmem:[%s3926_s1 + $0x5c] ss:$40 sps:$4 sm:$0xff]   ;;  %657 = vmatprep.mubr.bf16.mxu0 %v3222_v2  ;;  %730 = vmatprep.mubr.bf16.mxu1 %v3222_v2  ;;  %v3017_v4 = vld [vmem:[%s3926_s1 + $0x58] ss:$40 sps:$4 sm:$0xff]   ;;  %v3020_v6 = vld [vmem:[%s3926_s1 + $0xc] ss:$40 sps:$4 sm:$0xff]  }
  0x18   : > { %637 = vmatprep.subr.bf16.mxu0 %v3012_v0  ;;  %710 = vmatprep.subr.bf16.mxu1 %v3014_v1  ;;  %v3018_v5 = vld [vmem:[%s3926_s1 + $0x4] ss:$40 sps:$4 sm:$0xff]   ;;  %v3022_v7 = vld [vmem:[%s3926_s1] ss:$40 sps:$4 sm:$0xff]   ;;  %s2768_s30 = sshll.u32 %s3363_s17, 5  ;;  %vm612_vm0 = vcmask 261120   ;;  %s452_s25 = scalar_lea.vmem %s3927_s2, %s3363_s17 }
  0x19   : > { %638 = vmatpush1.bf16.msra.mxu0 %v3016_v3  ;;  %711 = vmatpush1.bf16.msra.mxu1 %v3017_v4  ;;  %v3023_v8 = vld [vmem:[%s3926_s1 + $0x8] ss:$40 sps:$4 sm:$0xff]   ;;  %s3381_s18 = scalar_lea.vmem %s3925_s0, %s2768_s30  ;;  %v3027_v11 = vld [vmem:[%s3926_s1 + $0x64] ss:$40 sps:$4 sm:$0xff]   ;;  %v3035_v15 = vld [vmem:[%s3926_s1 + $0x14] ss:$40 sps:$4 sm:$0xff]  }
  0x1a   : > { %639 = vmatprep.subr.bf16.mxu0 %v3018_v5  ;;  %712 = vmatprep.subr.bf16.mxu1 %v3020_v6  ;;  %v3024_v9 = vld [vmem:[%s3381_s18] sm:$0xff]   ;;  %v3028_v12 = vld [vmem:[%s3926_s1 + $0x68] ss:$40 sps:$4 sm:$0xff]   ;;  %v3030_v13 = vld [vmem:[%s3926_s1 + $0x6c] ss:$40 sps:$4 sm:$0xff]   ;;  %vm3564_vm1 = vcmp.lt.s32.totalorder %v459_v59, 256 }
  0x1b   : > { %v3025_v10 = vld [vmem:[%s3926_s1 + $0x60] ss:$40 sps:$4 sm:$0xff]   ;;  %v3033_v14 = vld [vmem:[%s3926_s1 + $0x10] ss:$40 sps:$4 sm:$0xff]   ;;  %v3038_v17 = vld [vmem:[%s3926_s1 + $0x1c] ss:$40 sps:$4 sm:$0xff]  }
  0x1c   : > { %v3036_v16 = vld [vmem:[%s3926_s1 + $0x18] ss:$40 sps:$4 sm:$0xff]   ;;  %v3031_v18 = vld [vmem:[%s3381_s18 + $0x8] sm:$0xff]   ;;  %v3042_v19 = vld [vmem:[%s3926_s1 + $0x74] ss:$40 sps:$4 sm:$0xff]   ;;  %v3223_v61 = vmov 0.0  }
  0x1d   : > { %640 = vmatpush1.bf16.msra.mxu0 %v3022_v7  ;;  %713 = vmatpush1.bf16.msra.mxu1 %v3023_v8  ;;  %v3032_v20 = vld [vmem:[%s3381_s18 + $0x10] sm:$0xff]   ;;  %v3039_v21 = vld [vmem:[%s3381_s18 + $0x18] sm:$0xff]   ;;  %v3045_v23 = vld [vmem:[%s3926_s1 + $0x24] ss:$40 sps:$4 sm:$0xff]   ;;  %463 = vst.msk [vmem:[#allocation2 + $0x8] sm:$0x3] %vm3564_vm1, %v3223_v61 }
  0x1e   : > { %783 = vmatprep.subr.bf16.mxu0 %v3027_v11  ;;  %856 = vmatprep.subr.bf16.mxu1 %v3030_v13  ;;  %v3040_v22 = vld [vmem:[%s3926_s1 + $0x70] ss:$40 sps:$4 sm:$0xff]   ;;  %v3043_v24 = vld [vmem:[%s3926_s1 + $0x20] ss:$40 sps:$4 sm:$0xff]   ;;  %vm3225_vm2 = vmmov 0   ;;  %vm2309_vm3 = vcmask 523264  }
  0x1f   : > { %v3046_v25 = vld [vmem:[%s3928_s3 + $0x78] sm:$0xff]   ;;  %v3050_v29 = vld [vmem:[%s3928_s3 + $0x70] sm:$0xff]   ;;  %v3054_v33 = vld [vmem:[%s3928_s3 + $0x68] sm:$0xff]   ;;  %s2765_s30 = sshll.u32 %s3212_s24, 4  ;;  %s439_s17 = scalar_lea.vmem [#allocation3], %s438_s28 }
  0x20   : > { %2644 = vmatmul.mubr.msk.bf16.vlgmr.msra.gmra.mxu0 %vm612_vm0, %v3024_v9  ;;  %2648 = vmatmul.mubr.msk.bf16.vlgmr.msra.gmra.mxu1 %vm612_vm0, %v3024_v9  ;;  %v3047_v26 = vld [vmem:[%s3928_s3 + $0xf8] sm:$0xff]   ;;  %v3051_v30 = vld [vmem:[%s3928_s3 + $0xf0] sm:$0xff]   ;;  %v3055_v34 = vld [vmem:[%s3928_s3 + $0xe8] sm:$0xff]   ;;  %s2535_s14 = sshll.u32 %s439_s17, 4  ;;  %s3879_s18 = scalar_lea.hbm %s3937_s12, %s2765_s30  ;;  %s3881_s14 = int_to_ptr.vmem [resolvable:$true] %s2535_s14 }
  0x21   : > { %784 = vmatpush1.bf16.msra.mxu0 %v3025_v10  ;;  %857 = vmatpush1.bf16.msra.mxu1 %v3028_v12  ;;  %v3048_v27 = vld [vmem:[%s3928_s3 + $0x38] sm:$0xff]   ;;  %v3052_v31 = vld [vmem:[%s3928_s3 + $0x30] sm:$0xff]   ;;  %v3056_v35 = vld [vmem:[%s3928_s3 + $0x28] sm:$0xff]   ;;  %s3144_s27 = scalar_lea.vmem %s3881_s14, 16  ;;  %s3226_s24 = smov [#allocation3]  }
  0x22   : > { %667 = vmatprep.mubr.bf16.mxu0 %v3222_v2  ;;  %740 = vmatprep.mubr.bf16.mxu1 %v3222_v2  ;;  %v3049_v28 = vld [vmem:[%s3928_s3 + $0xb8] sm:$0xff]   ;;  %v3053_v32 = vld [vmem:[%s3928_s3 + $0xb0] sm:$0xff]   ;;  %v3057_v36 = vld [vmem:[%s3928_s3 + $0xa8] sm:$0xff]   ;;  %p3145_p12 = scmp.ne.s32.totalorder %s3881_s14, %s3144_s27 }
  0x23   : > { %785 = vmatprep.subr.bf16.mxu0 %v3035_v15  ;;  %858 = vmatprep.subr.bf16.mxu1 %v3038_v17  ;;  %v3058_v37 = vld [vmem:[%s3928_s3 + $0x60] sm:$0xff]   ;;  %v3062_v41 = vld [vmem:[%s3928_s3 + $0x58] sm:$0xff]   ;;  %v3066_v45 = vld [vmem:[%s3928_s3 + $0x50] sm:$0xff]  }
  0x24   : > { %v3059_v38 = vld [vmem:[%s3928_s3 + $0xe0] sm:$0xff]   ;;  %v3063_v42 = vld [vmem:[%s3928_s3 + $0xd8] sm:$0xff]   ;;  %v3067_v46 = vld [vmem:[%s3928_s3 + $0xd0] sm:$0xff]   ;;  %p3146_p13 = pnand %p3145_p12, %p3332_p4 }
  0x25   : > { %786 = vmatpush1.bf16.msra.mxu0 %v3033_v14  ;;  %859 = vmatpush1.bf16.msra.mxu1 %v3036_v16  ;;  %v3060_v39 = vld [vmem:[%s3928_s3 + $0x20] sm:$0xff]   ;;  %v3064_v43 = vld [vmem:[%s3928_s3 + $0x18] sm:$0xff]   ;;  %v3068_v47 = vld [vmem:[%s3928_s3 + $0x10] sm:$0xff]  }
  0x26   : > { %929 = vmatprep.subr.bf16.mxu0 %v3042_v19  ;;  %2769 = vmatprep.subr.bf16.mxu1 %v3046_v25  ;;  %v3061_v40 = vld [vmem:[%s3928_s3 + $0xa0] sm:$0xff]   ;;  %v3065_v44 = vld [vmem:[%s3928_s3 + $0x98] sm:$0xff]   ;;  %v3069_v48 = vld [vmem:[%s3928_s3 + $0x90] sm:$0xff]   ;;  %p3147_p0 = pneg %p3146_p13 }
  0x27   : > { %v3070_v49 = vld [vmem:[%s3928_s3 + $0x48] sm:$0xff]   ;;  %v3074_v53 = vld [vmem:[%s3928_s3 + $0x40] sm:$0xff]   ;;  %v3078_v57 = vld [vmem:[%s3928_s3 + $0x178] sm:$0xff]  }
  0x28   : > { %2645 = vmatmul.mubr.msk.bf16.gmra.mxu0 %vm612_vm0, %v3031_v18  ;;  %2649 = vmatmul.mubr.msk.bf16.gmra.mxu1 %vm612_vm0, %v3031_v18  ;;  %v3071_v50 = vld [vmem:[%s3928_s3 + $0xc8] sm:$0xff]   ;;  %v3075_v54 = vld [vmem:[%s3928_s3 + $0xc0] sm:$0xff]   ;;  %v3079_v58 = vld [vmem:[%s3928_s3 + $0x1f8] sm:$0xff]  }
  0x29   : > { %677 = vmatprep.mubr.bf16.mxu0 %v3222_v2  ;;  %750 = vmatprep.mubr.bf16.mxu1 %v3222_v2  ;;  %v3072_v51 = vld [vmem:[%s3928_s3 + $0x8] sm:$0xff]   ;;  %v3076_v55 = vld [vmem:[%s3928_s3] sm:$0xff]  }
  0x2a   : > { %v3073_v52 = vld [vmem:[%s3928_s3 + $0x88] sm:$0xff]   ;;  %v3077_v56 = vld [vmem:[%s3928_s3 + $0x80] sm:$0xff]  }
  0x2b   : > { %v3107_v60 = vld [vmem:[%s3928_s3 + $0x1c0] sm:$0xff]  }
  0x30   : > { %2646 = vmatmul.mubr.msk.bf16.gmra.mxu0 %vm612_vm0, %v3032_v20  ;;  %2650 = vmatmul.mubr.msk.bf16.gmra.mxu1 %vm612_vm0, %v3032_v20 }
  0x31   : > { %687 = vmatprep.mubr.bf16.mxu0 %v3222_v2  ;;  %760 = vmatprep.mubr.bf16.mxu1 %v3222_v2 }
  0x38   : > { %2647 = vmatmul.mubr.msk.bf16.gmra.mxu0 %vm612_vm0, %v3039_v21  ;;  %2651 = vmatmul.mubr.msk.bf16.gmra.mxu1 %vm612_vm0, %v3039_v21 }
  0x39   : > { %803 = vmatprep.mubr.bf16.mxu0 %v3222_v2  ;;  %876 = vmatprep.mubr.bf16.mxu1 %v3222_v2 }
  0x40   : > { %2652 = vmatmul.mubr.msk.bf16.vlgmr.msra.gmra.mxu0 %vm612_vm0, %v3024_v9  ;;  %2656 = vmatmul.mubr.msk.bf16.vlgmr.msra.gmra.mxu1 %vm612_vm0, %v3024_v9 }
  0x41   : > { %813 = vmatprep.mubr.bf16.mxu0 %v3222_v2  ;;  %886 = vmatprep.mubr.bf16.mxu1 %v3222_v2 }
  0x42   : > { %930 = vmatpush1.bf16.msra.mxu0 %v3040_v22  ;;  %2770 = vmatpush3.bf16.msra.mxu1 %v3048_v27 }
  0x43   : > { %931 = vmatprep.subr.bf16.mxu0 %v3045_v23  ;;  %2771 = vmatprep.subr.bf16.mxu1 %v3050_v29 }
  0x46   : > { %932 = vmatpush1.bf16.msra.mxu0 %v3043_v24  ;;  %2772 = vmatpush3.bf16.msra.mxu1 %v3052_v31 }
  0x47   : > { %2791 = vmatprep.subr.bf16.mxu0 %v3047_v26  ;;  %2773 = vmatprep.subr.bf16.mxu1 %v3054_v33 }
  0x48   : > { %2653 = vmatmul.mubr.msk.bf16.gmra.mxu0 %vm612_vm0, %v3031_v18  ;;  %2657 = vmatmul.mubr.msk.bf16.gmra.mxu1 %vm612_vm0, %v3031_v18 }
  0x49   : > { %823 = vmatprep.mubr.bf16.mxu0 %v3222_v2  ;;  %896 = vmatprep.mubr.bf16.mxu1 %v3222_v2 }
  0x4a   : > { %2774 = vmatpush3.bf16.msra.mxu1 %v3056_v35 }
  0x4b   : > { %2775 = vmatprep.subr.bf16.mxu1 %v3058_v37 }
  0x4e   : > { %2776 = vmatpush3.bf16.msra.mxu1 %v3060_v39 }
  0x4f   : > { %2777 = vmatprep.subr.bf16.mxu1 %v3062_v41 }
  0x50   : > { %2654 = vmatmul.mubr.msk.bf16.gmra.mxu0 %vm612_vm0, %v3032_v20  ;;  %2658 = vmatmul.mubr.msk.bf16.gmra.mxu1 %vm612_vm0, %v3032_v20 }
  0x51   : > { %833 = vmatprep.mubr.bf16.mxu0 %v3222_v2  ;;  %906 = vmatprep.mubr.bf16.mxu1 %v3222_v2 }
  0x52   : > { %2778 = vmatpush3.bf16.msra.mxu1 %v3064_v43 }
  0x53   : > { %2779 = vmatprep.subr.bf16.mxu1 %v3066_v45 }
  0x56   : > { %2780 = vmatpush3.bf16.msra.mxu1 %v3068_v47 }
  0x57   : > { %2781 = vmatprep.subr.bf16.mxu1 %v3070_v49 }
  0x58   : > { %2655 = vmatmul.mubr.msk.bf16.gmra.mxu0 %vm612_vm0, %v3039_v21  ;;  %2659 = vmatmul.mubr.msk.bf16.gmra.mxu1 %vm612_vm0, %v3039_v21 }
  0x59   : > { %949 = vmatprep.mubr.bf16.mxu0 %v3222_v2 }
  0x5a   : > { %2782 = vmatpush3.bf16.msra.mxu1 %v3072_v51 }
  0x5b   : > { %2783 = vmatprep.subr.bf16.mxu1 %v3074_v53 }
  0x5e   : > { %2784 = vmatpush3.bf16.msra.mxu1 %v3076_v55 }
  0x5f   : > { %2813 = vmatprep.subr.bf16.mxu1 %v3078_v57 }
  0x60   : > { %2660 = vmatmul.mubr.msk.bf16.vlgmr.msra.gmra.mxu0 %vm612_vm0, %v3024_v9 }
  0x61   : > { %959 = vmatprep.mubr.bf16.mxu0 %v3222_v2  ;;  %2792 = vmatpush3.bf16.msra.mxu0 %v3049_v28 }
  0x62   : > { %2793 = vmatprep.subr.bf16.mxu0 %v3051_v30 }
  0x65   : > { %2794 = vmatpush3.bf16.msra.mxu0 %v3053_v32 }
  0x66   : > { %2795 = vmatprep.subr.bf16.mxu0 %v3055_v34 }
  0x68   : > { %2661 = vmatmul.mubr.msk.bf16.gmra.mxu0 %vm612_vm0, %v3031_v18 }
  0x69   : > { %969 = vmatprep.mubr.bf16.mxu0 %v3222_v2  ;;  %2796 = vmatpush3.bf16.msra.mxu0 %v3057_v36 }
  0x6a   : > { %2797 = vmatprep.subr.bf16.mxu0 %v3059_v38 }
  0x6d   : > { %2798 = vmatpush3.bf16.msra.mxu0 %v3061_v40 }
  0x6e   : > { %2799 = vmatprep.subr.bf16.mxu0 %v3063_v42 }
  0x70   : > { %2662 = vmatmul.mubr.msk.bf16.gmra.mxu0 %vm612_vm0, %v3032_v20 }
  0x71   : > { %979 = vmatprep.mubr.bf16.mxu0 %v3222_v2  ;;  %2800 = vmatpush3.bf16.msra.mxu0 %v3065_v44 }
  0x72   : > { %2801 = vmatprep.subr.bf16.mxu0 %v3067_v46 }
  0x75   : > { %2802 = vmatpush3.bf16.msra.mxu0 %v3069_v48 }
  0x76   : > { %2803 = vmatprep.subr.bf16.mxu0 %v3071_v50 }
  0x78   : > { %2663 = vmatmul.mubr.msk.bf16.gmra.mxu0 %vm612_vm0, %v3039_v21 }
  0x79   : > { %2804 = vmatpush3.bf16.msra.mxu0 %v3073_v52 }
  0x7a   : > { %2805 = vmatprep.subr.bf16.mxu0 %v3075_v54 }
  0x7d   : > { %2806 = vmatpush3.bf16.msra.mxu0 %v3077_v56 }
  0x7e   : > { %2835 = vmatprep.subr.bf16.mxu0 %v3079_v58 }
  0xe0   : > { %v659_v62 = vpop.f32.mrf.mxu0  ;;  %v732_v63 = vpop.f32.mrf.mxu1 }
  0xe1   : > { %v990_v22 = vmax.f32 %v659_v62, 0.0  ;;  %v992_v28 = vmax.f32 %v732_v63, 0.0 }
  0xe2   : > { %v661_v0 = vpop.f32.mrf.mxu0  ;;  %v734_v1 = vpop.f32.mrf.mxu1 }
  0xe3   : > { %v991_v29 = vmax.f32 %v661_v0, 0.0  ;;  %v993_v30 = vmax.f32 %v734_v1, 0.0 }
  0xe4   : > { %v663_v2 = vpop.f32.mrf.mxu0  ;;  %v736_v3 = vpop.f32.mrf.mxu1 }
  0xe5   : > { %v1000_v18 = vmax.f32 %v663_v2, 0.0  ;;  %v1002_v23 = vmax.f32 %v736_v3, 0.0 }
  0xe6   : > { %v665_v4 = vpop.f32.mrf.mxu0  ;;  %v738_v5 = vpop.f32.mrf.mxu1 }
  0xe7   : > { %v1001_v21 = vmax.f32 %v665_v4, 0.0  ;;  %v1003_v24 = vmax.f32 %v738_v5, 0.0  ;;  %v1072_v32 = vadd.f32 %v1000_v18, %v990_v22  ;;  %v1098_v40 = vadd.f32 %v1002_v23, %v992_v28 }
  0xe8   : > { %v669_v6 = vpop.f32.mrf.mxu0  ;;  %v742_v7 = vpop.f32.mrf.mxu1 }
  0xe9   : > { %v1010_v25 = vmax.f32 %v669_v6, 0.0  ;;  %v1012_v33 = vmax.f32 %v742_v7, 0.0  ;;  %v1085_v38 = vadd.f32 %v1001_v21, %v991_v29  ;;  %v1111_v41 = vadd.f32 %v1003_v24, %v993_v30 }
  0xea   : > { %v671_v8 = vpop.f32.mrf.mxu0  ;;  %v744_v9 = vpop.f32.mrf.mxu1 }
  0xeb   : > { %v1011_v31 = vmax.f32 %v671_v8, 0.0  ;;  %v1013_v34 = vmax.f32 %v744_v9, 0.0  ;;  %v1073_v42 = vadd.f32 %v1072_v32, %v1010_v25  ;;  %v1099_v50 = vadd.f32 %v1098_v40, %v1012_v33 }
  0xec   : > { %v673_v10 = vpop.f32.mrf.mxu0  ;;  %v746_v11 = vpop.f32.mrf.mxu1 }
  0xed   : > { %v1020_v35 = vmax.f32 %v673_v10, 0.0  ;;  %v1086_v46 = vadd.f32 %v1085_v38, %v1011_v31  ;;  %v1022_v47 = vmax.f32 %v746_v11, 0.0  ;;  %v1112_v51 = vadd.f32 %v1111_v41, %v1013_v34 }
  0xee   : > { %v675_v12 = vpop.f32.mrf.mxu0  ;;  %v748_v13 = vpop.f32.mrf.mxu1 }
  0xef   : > { %v1021_v39 = vmax.f32 %v675_v12, 0.0  ;;  %v1023_v43 = vmax.f32 %v748_v13, 0.0  ;;  %v1074_v52 = vadd.f32 %v1073_v42, %v1020_v35  ;;  %v1100_v3 = vadd.f32 %v1099_v50, %v1022_v47 }
  0xf0   : > { %v679_v14 = vpop.f32.mrf.mxu0  ;;  %v752_v15 = vpop.f32.mrf.mxu1 }
  0xf1   : > { %v1030_v48 = vmax.f32 %v679_v14, 0.0  ;;  %v1087_v56 = vadd.f32 %v1086_v46, %v1021_v39  ;;  %v1032_v57 = vmax.f32 %v752_v15, 0.0  ;;  %v1113_v63 = vadd.f32 %v1112_v51, %v1023_v43 }
  0xf2   : > { %v681_v16 = vpop.f32.mrf.mxu0  ;;  %v754_v17 = vpop.f32.mrf.mxu1 }
  0xf3   : > { %v1031_v49 = vmax.f32 %v681_v16, 0.0  ;;  %v1033_v53 = vmax.f32 %v754_v17, 0.0  ;;  %v1075_v4 = vadd.f32 %v1074_v52, %v1030_v48  ;;  %v1101_v13 = vadd.f32 %v1100_v3, %v1032_v57 }
  0xf4   : > { %v683_v19 = vpop.f32.mrf.mxu0  ;;  %v3571_v20 = vpop.f32.mrf.mxu1 }
  0xf5   : > { %v1040_v58 = vmax.f32 %v683_v19, 0.0  ;;  %v1088_v5 = vadd.f32 %v1087_v56, %v1031_v49  ;;  %v1114_v7 = vadd.f32 %v1113_v63, %v1033_v53  ;;  %v1042_v8 = vmax.f32 %v3571_v20, 0.0 }
  0xf6   : > { %v685_v26 = vpop.f32.mrf.mxu0  ;;  %v758_v27 = vpop.f32.mrf.mxu1  ;;  %v3224_v49 = vmov 1966171168  }
  0xf7   : > { %v1041_v62 = vmax.f32 %v685_v26, 0.0  ;;  %v1043_v0 = vmax.f32 %v758_v27, 0.0  ;;  %v1076_v14 = vadd.f32 %v1075_v4, %v1040_v58  ;;  %v1102_v25 = vadd.f32 %v1101_v13, %v1042_v8 }
  0xf8   : > { %v689_v36 = vpop.f32.mrf.mxu0  ;;  %v762_v37 = vpop.f32.mrf.mxu1  ;;  %v3580_v50 = vunpack.c.l.s4 %v3224_v49 }
  0xf9   : > { %v1050_v6 = vmax.f32 %v689_v36, 0.0  ;;  %v1089_v15 = vadd.f32 %v1088_v5, %v1041_v62  ;;  %v1115_v17 = vadd.f32 %v1114_v7, %v1043_v0  ;;  %v1052_v18 = vmax.f32 %v762_v37, 0.0 }
  0xfa   : > { %v691_v44 = vpop.f32.mrf.mxu0  ;;  %v764_v45 = vpop.f32.mrf.mxu1 }
  0xfb   : > { %v1051_v9 = vmax.f32 %v691_v44, 0.0  ;;  %v1053_v10 = vmax.f32 %v764_v45, 0.0  ;;  %v1077_v24 = vadd.f32 %v1076_v14, %v1050_v6  ;;  %v1103_v31 = vadd.f32 %v1102_v25, %v1052_v18 }
  0xfc   : > { %v693_v54 = vpop.f32.mrf.mxu0  ;;  %v766_v55 = vpop.f32.mrf.mxu1 }
  0xfd   : > { %v1060_v16 = vmax.f32 %v693_v54, 0.0  ;;  %v1090_v26 = vadd.f32 %v1089_v15, %v1051_v9  ;;  %v1116_v20 = vadd.f32 %v1115_v17, %v1053_v10  ;;  %v1062_v27 = vmax.f32 %v766_v55, 0.0 }
  0xfe   : > { %v695_v1 = vpop.f32.mrf.mxu0  ;;  %v768_v2 = vpop.f32.mrf.mxu1 }
  0xff   : > { %v1061_v19 = vmax.f32 %v695_v1, 0.0  ;;  %v1063_v21 = vmax.f32 %v768_v2, 0.0  ;;  %v1078_v30 = vadd.f32 %v1077_v24, %v1060_v16  ;;  %v1104_v36 = vadd.f32 %v1103_v31, %v1062_v27 }
 0x100   : > { %v3574_v11 = vpop.f32.mrf.mxu0  ;;  %v3576_v12 = vpop.f32.mrf.mxu1 }
 0x101   : > { %v1091_v32 = vadd.f32 %v1090_v26, %v1061_v19  ;;  %v1117_v33 = vadd.f32 %v1116_v20, %v1063_v21  ;;  %v1079_v39 = vrot.slane %v1078_v30, 4  ;;  %v1105_v44 = vrot.slane %v1104_v36, 4 }
 0x102   : > { %v807_v22 = vpop.f32.mrf.mxu0  ;;  %v880_v23 = vpop.f32.mrf.mxu1  ;;  %v994_v54 = vmax.f32 %v3574_v11, 0.0  ;;  %v996_v55 = vmax.f32 %v3576_v12, 0.0 }
 0x103   : > { %v1092_v40 = vrot.slane %v1091_v32, 4  ;;  %v1118_v41 = vrot.slane %v1117_v33, 4  ;;  %v3578_v47 = vadd.f32 %v1079_v39, %v1078_v30  ;;  %v3586_v58 = vadd.f32 %v1105_v44, %v1104_v36 }
 0x104   : > { %v809_v28 = vpop.f32.mrf.mxu0  ;;  %v882_v29 = vpop.f32.mrf.mxu1  ;;  %v995_v62 = vmax.f32 %v807_v22, 0.0  ;;  %v997_v4 = vmax.f32 %v880_v23, 0.0 }
 0x105   : > { %v1093_v48 = vadd.f32 %v1092_v40, %v1091_v32  ;;  %v3582_v51 = vadd.f32 %v1118_v41, %v1117_v33  ;;  %v1004_v56 = vmax.f32 %v809_v28, 0.0  ;;  %v1006_v57 = vmax.f32 %v882_v29, 0.0 }
 0x106   : > { %v811_v34 = vpop.f32.mrf.mxu0  ;;  %v884_v35 = vpop.f32.mrf.mxu1  ;;  %v1081_v3 = vrot.slane %v3578_v47, 2  ;;  %v1107_v49 = vrot.slane %v3586_v58, 2 }
 0x107   : > { %v1005_v63 = vmax.f32 %v811_v34, 0.0  ;;  %v1007_v0 = vmax.f32 %v884_v35, 0.0  ;;  %v1094_v7 = vrot.slane %v1093_v48, 2  ;;  %v1120_v8 = vrot.slane %v3582_v51, 2 }
 0x108   : > { %v815_v38 = vpop.f32.mrf.mxu0  ;;  %v888_v37 = vpop.f32.mrf.mxu1  ;;  %v1124_v13 = vadd.f32 %v1004_v56, %v994_v54  ;;  %v1150_v14 = vadd.f32 %v1006_v57, %v996_v55 }
 0x109   : > { %v1014_v5 = vmax.f32 %v815_v38, 0.0  ;;  %v1016_v6 = vmax.f32 %v888_v37, 0.0  ;;  %v1137_v17 = vadd.f32 %v1005_v63, %v995_v62  ;;  %v1163_v18 = vadd.f32 %v1007_v0, %v997_v4 }
 0x10a   : > { %v817_v42 = vpop.f32.mrf.mxu0  ;;  %v890_v43 = vpop.f32.mrf.mxu1 }
 0x10b   : > { %v1015_v9 = vmax.f32 %v817_v42, 0.0  ;;  %v1017_v10 = vmax.f32 %v890_v43, 0.0  ;;  %v1125_v23 = vadd.f32 %v1124_v13, %v1014_v5  ;;  %v1151_v25 = vadd.f32 %v1150_v14, %v1016_v6 }
 0x10c   : > { %v819_v45 = vpop.f32.mrf.mxu0  ;;  %v892_v46 = vpop.f32.mrf.mxu1 }
 0x10d   : > { %v1024_v15 = vmax.f32 %v819_v45, 0.0  ;;  %v1026_v16 = vmax.f32 %v892_v46, 0.0  ;;  %v1138_v27 = vadd.f32 %v1137_v17, %v1015_v9  ;;  %v1164_v28 = vadd.f32 %v1163_v18, %v1017_v10 }
 0x10e   : > { %v821_v52 = vpop.f32.mrf.mxu0  ;;  %v894_v53 = vpop.f32.mrf.mxu1 }
 0x10f   : > { %v1025_v19 = vmax.f32 %v821_v52, 0.0  ;;  %v1027_v21 = vmax.f32 %v894_v53, 0.0  ;;  %v1126_v33 = vadd.f32 %v1125_v23, %v1024_v15  ;;  %v1152_v34 = vadd.f32 %v1151_v25, %v1026_v16 }
 0x110   : > { %v825_v1 = vpop.f32.mrf.mxu0  ;;  %v898_v2 = vpop.f32.mrf.mxu1  ;;  %v1095_v52 = vadd.f32 %v1094_v7, %v1093_v48  ;;  %v1108_v7 = vadd.f32 %v1107_v49, %v3586_v58 }
 0x111   : > { %v1034_v26 = vmax.f32 %v825_v1, 0.0  ;;  %v1036_v20 = vmax.f32 %v898_v2, 0.0  ;;  %v1139_v38 = vadd.f32 %v1138_v27, %v1025_v19  ;;  %v1165_v37 = vadd.f32 %v1164_v28, %v1027_v21 }
 0x112   : > { %v827_v11 = vpop.f32.mrf.mxu0  ;;  %v900_v12 = vpop.f32.mrf.mxu1  ;;  %v1082_v1 = vadd.f32 %v1081_v3, %v3578_v47  ;;  %v1121_v2 = vadd.f32 %v1120_v8, %v3582_v51  ;;  %v1096_v13 = vrot.slane %v1095_v52, 1  ;;  %v1218_v8 = vunpack.c.0.s8 %v3580_v50 }
 0x113   : > { %v1035_v29 = vmax.f32 %v827_v11, 0.0  ;;  %v1037_v30 = vmax.f32 %v900_v12, 0.0  ;;  %v1127_v43 = vadd.f32 %v1126_v33, %v1034_v26  ;;  %v1153_v44 = vadd.f32 %v1152_v34, %v1036_v20 }
 0x114   : > { %v829_v22 = vpop.f32.mrf.mxu0  ;;  %v902_v24 = vpop.f32.mrf.mxu1  ;;  %v1083_v51 = vrot.slane %v1082_v1, 1  ;;  %v3596_v21 = vshrl.u32 %v459_v59, 7  ;;  %v1109_v20 = vrot.slane %v1108_v7, 1  ;;  %v1097_v27 = vadd.f32 %v1096_v13, %v1095_v52 }
 0x115   : > { %v1044_v35 = vmax.f32 %v829_v22, 0.0  ;;  %v1046_v36 = vmax.f32 %v902_v24, 0.0  ;;  %v1140_v53 = vadd.f32 %v1139_v38, %v1035_v29  ;;  %v1166_v54 = vadd.f32 %v1165_v37, %v1037_v30 }
 0x116   : > { %v831_v31 = vpop.f32.mrf.mxu0  ;;  %v904_v32 = vpop.f32.mrf.mxu1  ;;  %v1122_v22 = vrot.slane %v1121_v2, 1  ;;  %v1084_v33 = vadd.f32 %v1083_v51, %v1082_v1  ;;  %v3599_v34 = vsub.s32 %v1218_v8, %v3596_v21 }
 0x117   : > { %v1045_v39 = vmax.f32 %v831_v31, 0.0  ;;  %v1047_v40 = vmax.f32 %v904_v32, 0.0  ;;  %v1128_v57 = vadd.f32 %v1127_v43, %v1044_v35  ;;  %v1154_v62 = vadd.f32 %v1153_v44, %v1046_v36 }
 0x118   : > { %v835_v41 = vpop.f32.mrf.mxu0  ;;  %v908_v42 = vpop.f32.mrf.mxu1  ;;  %v1123_v50 = vadd.f32 %v1122_v22, %v1121_v2 }
 0x119   : > { %v1054_v45 = vmax.f32 %v835_v41, 0.0  ;;  %v1056_v46 = vmax.f32 %v908_v42, 0.0  ;;  %v1141_v4 = vadd.f32 %v1140_v53, %v1045_v39  ;;  %v1167_v5 = vadd.f32 %v1166_v54, %v1047_v40 }
 0x11a   : > { %v837_v55 = vpop.f32.mrf.mxu0  ;;  %v910_v56 = vpop.f32.mrf.mxu1  ;;  %v1110_v40 = vadd.f32 %v1109_v20, %v1108_v7  ;;  %v1212_v41 = vcombine.low %v1084_v33, %v1097_v27 }
 0x11b   : > { %v1055_v63 = vmax.f32 %v837_v55, 0.0  ;;  %v1057_v0 = vmax.f32 %v910_v56, 0.0  ;;  %v1129_v10 = vadd.f32 %v1128_v57, %v1054_v45  ;;  %v1155_v11 = vadd.f32 %v1154_v62, %v1056_v46 }
 0x11c   : > { %v839_v6 = vpop.f32.mrf.mxu0  ;;  %v912_v9 = vpop.f32.mrf.mxu1  ;;  %v1213_v53 = vcombine.low %v1110_v40, %v1123_v50 }
 0x11d   : > { %v1064_v12 = vmax.f32 %v839_v6, 0.0  ;;  %v1066_v48 = vmax.f32 %v912_v9, 0.0  ;;  %v1142_v14 = vadd.f32 %v1141_v4, %v1055_v63  ;;  %v1168_v15 = vadd.f32 %v1167_v5, %v1057_v0 }
 0x11e   : > { %v841_v16 = vpop.f32.mrf.mxu0  ;;  %v914_v17 = vpop.f32.mrf.mxu1  ;;  %v1222_v5 = vrot.slane %v1212_v41, %v3599_v34  ;;  %v1309_v41 = vsub.s32 3, %v3596_v21 }
 0x11f   : > { %v1130_v18 = vadd.f32 %v1129_v10, %v1064_v12  ;;  %v1156_v19 = vadd.f32 %v1155_v11, %v1066_v48  ;;  %v1065_v47 = vmax.f32 %v841_v16, 0.0  ;;  %v1067_v3 = vmax.f32 %v914_v17, 0.0 }
 0x120   : > { %v951_v24 = vpop.f32.mrf.mxu0  ;;  %v1229_v10 = vrot.slane %v1213_v53, %v3599_v34 }
 0x121   : > { %v1131_v23 = vrot.slane %v1130_v18, 4  ;;  %v1157_v25 = vrot.slane %v1156_v19, 4  ;;  %v1143_v58 = vadd.f32 %v1142_v14, %v1065_v47  ;;  %v1169_v26 = vadd.f32 %v1168_v15, %v1067_v3 }
 0x122   : > { %v953_v28 = vpop.f32.mrf.mxu0  ;;  %v998_v59 = vmax.f32 %v951_v24, 0.0  ;;  %v1244_v8 = vcombine.low %v1222_v5, %v1229_v10 }
 0x123   : > { %v1132_v29 = vadd.f32 %v1131_v23, %v1130_v18  ;;  %v1158_v30 = vadd.f32 %v1157_v25, %v1156_v19  ;;  %v1144_v31 = vrot.slane %v1143_v58, 4  ;;  %v1170_v32 = vrot.slane %v1169_v26, 4 }
 0x124   : > { %v955_v35 = vpop.f32.mrf.mxu0  ;;  %v999_v42 = vmax.f32 %v953_v28, 0.0 }
 0x125   : > { %v1133_v36 = vrot.slane %v1132_v29, 2  ;;  %v1159_v38 = vrot.slane %v1158_v30, 2  ;;  %v1145_v37 = vadd.f32 %v1144_v31, %v1143_v58  ;;  %v1171_v39 = vadd.f32 %v1170_v32, %v1169_v26 }
 0x126   : > { %v1008_v43 = vmax.f32 %v955_v35, 0.0  ;;  %v957_v44 = vpop.f32.mrf.mxu0 }
 0x127   : > { %v1134_v45 = vadd.f32 %v1133_v36, %v1132_v29  ;;  %v1160_v46 = vadd.f32 %v1159_v38, %v1158_v30  ;;  %v1146_v49 = vrot.slane %v1145_v37, 2  ;;  %v1172_v52 = vrot.slane %v1171_v39, 2 }
 0x128   : > { %v1176_v54 = vadd.f32 %v1008_v43, %v998_v59  ;;  %v1009_v55 = vmax.f32 %v957_v44, 0.0  ;;  %v961_v56 = vpop.f32.mrf.mxu0  ;;  %v1252_v30 = vrot.slane %v1244_v8, %v3599_v34  ;;  %v1297_v43 = vsub.s32 0, %v3596_v21  ;;  %v3086_v8 = vld [vmem:[%s3928_s3 + $0x168] sm:$0xff]  }
 0x129   : > { %v1135_v57 = vrot.slane %v1134_v45, 1  ;;  %v1161_v62 = vrot.slane %v1160_v46, 1  ;;  %v1147_v63 = vadd.f32 %v1146_v49, %v1145_v37  ;;  %v1173_v0 = vadd.f32 %v1172_v52, %v1171_v39 }
 0x12a   : > { %v1189_v1 = vadd.f32 %v1009_v55, %v999_v42  ;;  %v1018_v2 = vmax.f32 %v961_v56, 0.0  ;;  %v963_v4 = vpop.f32.mrf.mxu0  ;;  %v1301_v37 = vsub.s32 1, %v3596_v21  ;;  %v1305_v44 = vsub.s32 2, %v3596_v21 }
 0x12b   : > { %v1148_v6 = vrot.slane %v1147_v63, 1  ;;  %v1174_v9 = vrot.slane %v1173_v0, 1  ;;  %v1136_v11 = vadd.f32 %v1135_v57, %v1134_v45  ;;  %v1019_v48 = vmax.f32 %v963_v4, 0.0 }
 0x12c   : > { %v1177_v12 = vadd.f32 %v1176_v54, %v1018_v2  ;;  %v965_v7 = vpop.f32.mrf.mxu0  ;;  %v1162_v13 = vadd.f32 %v1161_v62, %v1160_v46  ;;  %v1317_v45 = vsub.s32 5, %v3596_v21  ;;  %v1325_v46 = vsub.s32 7, %v3596_v21 }
 0x12d   : > { %v1149_v14 = vadd.f32 %v1148_v6, %v1147_v63  ;;  %v1175_v15 = vadd.f32 %v1174_v9, %v1173_v0  ;;  %v1028_v16 = vmax.f32 %v965_v7, 0.0  ;;  %v1190_v17 = vadd.f32 %v1189_v1, %v1019_v48 }
 0x12e   : > { %v967_v18 = vpop.f32.mrf.mxu0 }
 0x12f   : > { %v1214_v19 = vcombine.low %v1136_v11, %v1149_v14  ;;  %v1215_v47 = vcombine.low %v1162_v13, %v1175_v15  ;;  %v1178_v3 = vadd.f32 %v1177_v12, %v1028_v16  ;;  %v1029_v51 = vmax.f32 %v967_v18, 0.0  ;;  %v3080_v11 = vld [vmem:[%s3928_s3 + $0x138] sm:$0xff]   ;;  %v3082_v15 = vld [vmem:[%s3928_s3 + $0x170] sm:$0xff]  }
 0x130   : > { %v971_v22 = vpop.f32.mrf.mxu0  ;;  %v3081_v12 = vld [vmem:[%s3928_s3 + $0x1b8] sm:$0xff]   ;;  %v3083_v16 = vld [vmem:[%s3928_s3 + $0x1f0] sm:$0xff]  }
 0x131   : > { %v1236_v24 = vrot.slane %v1214_v19, %v3599_v34  ;;  %v1243_v23 = vrot.slane %v1215_v47, %v3599_v34  ;;  %v1191_v25 = vadd.f32 %v1190_v17, %v1029_v51  ;;  %v1038_v58 = vmax.f32 %v971_v22, 0.0  ;;  %v3085_v51 = vld [vmem:[%s3928_s3 + $0x1b0] sm:$0xff]   ;;  %v3087_v22 = vld [vmem:[%s3928_s3 + $0x1e8] sm:$0xff]  }
 0x132   : > { %v973_v26 = vpop.f32.mrf.mxu0 }
 0x133   : > { %v1245_v20 = vcombine.low %v1236_v24, %v1243_v23  ;;  %v1179_v27 = vadd.f32 %v1178_v3, %v1038_v58  ;;  %v1039_v28 = vmax.f32 %v973_v26, 0.0  ;;  %v3084_v3 = vld [vmem:[%s3928_s3 + $0x130] sm:$0xff]   ;;  %v3088_v26 = vld [vmem:[%s3928_s3 + $0x128] sm:$0xff]  }
 0x134   : > { %v975_v29 = vpop.f32.mrf.mxu0 }
 0x135   : > { %v1259_v31 = vrot.slane %v1245_v20, %v3599_v34  ;;  %v1192_v32 = vadd.f32 %v1191_v25, %v1039_v28  ;;  %v1048_v33 = vmax.f32 %v975_v29, 0.0  ;;  %v3089_v20 = vld [vmem:[%s3928_s3 + $0x1a8] sm:$0xff]   ;;  %v3091_v28 = vld [vmem:[%s3928_s3 + $0x1e0] sm:$0xff]  }
 0x136   : > { %v977_v50 = vpop.f32.mrf.mxu0 }
 0x137   : > { %v1260_v59 = vcombine.low %v1252_v30, %v1259_v31  ;;  %v1180_v35 = vadd.f32 %v1179_v27, %v1048_v33  ;;  %v1049_v36 = vmax.f32 %v977_v50, 0.0  ;;  %v3090_v27 = vld [vmem:[%s3928_s3 + $0x160] sm:$0xff]  }
 0x138   : > { %v981_v38 = vpop.f32.mrf.mxu0  ;;  %v3092_v33 = vld [vmem:[%s3928_s3 + $0x120] sm:$0xff]  }
 0x139   : > { %v1193_v39 = vadd.f32 %v1192_v32, %v1049_v36  ;;  %v1058_v40 = vmax.f32 %v981_v38, 0.0  ;;  %v3613_v53 = vmul.f32 0.015625, %v1260_v59  ;;  %v3093_v50 = vld [vmem:[%s3928_s3 + $0x1a0] sm:$0xff]   ;;  %v3094_v59 = vld [vmem:[%s3928_s3 + $0x158] sm:$0xff]  }
 0x13a   : > { %v983_v42 = vpop.f32.mrf.mxu0 }
 0x13b   : > { %v1181_v49 = vadd.f32 %v1180_v35, %v1058_v40  ;;  %v1059_v52 = vmax.f32 %v983_v42, 0.0  ;;  %v1302_v57 = vrot.slane %v3613_v53, %v1301_v37  ;;  %v1310_v62 = vrot.slane %v3613_v53, %v1309_v41  ;;  %v3095_v35 = vld [vmem:[%s3928_s3 + $0x1d8] sm:$0xff]   ;;  %v3098_v41 = vld [vmem:[%s3928_s3 + $0x150] sm:$0xff]  }
 0x13c   : > { %v985_v54 = vpop.f32.mrf.mxu0  ;;  %v1298_v0 = vrot.slane %v3613_v53, %v1297_v43  ;;  %v1306_v1 = vrot.slane %v3613_v53, %v1305_v44  ;;  %v1318_v2 = vrot.slane %v3613_v53, %v1317_v45  ;;  %v1326_v4 = vrot.slane %v3613_v53, %v1325_v46  ;;  %v3097_v40 = vld [vmem:[%s3928_s3 + $0x198] sm:$0xff]   ;;  %v3099_v42 = vld [vmem:[%s3928_s3 + $0x1d0] sm:$0xff]   ;;  %v1071_v45 = vld [vmem:[#allocation2 + $0x8] sm:$0x3] }
 0x13d   : > { %v1194_v55 = vadd.f32 %v1193_v39, %v1059_v52  ;;  %v1068_v56 = vmax.f32 %v985_v54, 0.0  ;;  %v1346_v6 = vpack.c.bf16 %v1302_v57, %v1302_v57  ;;  %v1348_v9 = vpack.c.bf16 %v1310_v62, %v1310_v62  ;;  %v3096_v39 = vld [vmem:[%s3928_s3 + $0x118] sm:$0xff]   ;;  %v3101_v52 = vld [vmem:[%s3928_s3 + $0x190] sm:$0xff]   ;;  %v3102_v54 = vld [vmem:[%s3928_s3 + $0x148] sm:$0xff]  }
 0x13e   : > { %v987_v63 = vpop.f32.mrf.mxu0  ;;  %v1345_v48 = vpack.c.bf16 %v1298_v0, %v1298_v0  ;;  %v1347_v7 = vpack.c.bf16 %v1306_v1, %v1306_v1  ;;  %v1350_v17 = vpack.c.bf16 %v1318_v2, %v1318_v2  ;;  %v1352_v18 = vpack.c.bf16 %v1326_v4, %v1326_v4  ;;  %v3105_v57 = vld [vmem:[%s3928_s3 + $0x188] sm:$0xff]   ;;  %v3106_v62 = vld [vmem:[%s3928_s3 + $0x140] sm:$0xff]  }
 0x13f   : > { %v1182_v5 = vadd.f32 %v1181_v49, %v1068_v56  ;;  %v1069_v10 = vmax.f32 %v987_v63, 0.0  ;;  %2028 = vmatprep.mubr.bf16.mxu1 %v1346_v6  ;;  %2068 = vmatprep.mubr.bf16.mxu0 %v1348_v9  ;;  %v3100_v49 = vld [vmem:[%s3928_s3 + $0x110] sm:$0xff]   ;;  %v3104_v56 = vld [vmem:[%s3928_s3 + $0x108] sm:$0xff]   ;;  %v1313_v63 = vsub.s32 4, %v3596_v21  ;;  %v1321_v0 = vsub.s32 6, %v3596_v21  ;;  %v3108_v1 = vld [vmem:[%s3928_s3 + $0x100] sm:$0xff]  }
 0x140   : > { %2029 = vmatmul.mubr.bf16.vlgmr.msra.gmra.mxu1 %v1345_v48  ;;  %2069 = vmatmul.mubr.bf16.vlgmr.msra.gmra.mxu0 %v1347_v7  ;;  %v3109_v2 = vld [vmem:[%s3928_s3 + $0x180] sm:$0xff]   ;;  %v3110_v6 = vld [vmem:[%s3928_s3 + $0x278] sm:$0xff]   ;;  %v3129_v21 = vld [vmem:[%s3932_s7 + $0x30] sm:$0xff]  }
 0x141   : > { %v1183_v13 = vrot.slane %v1182_v5, 4  ;;  %v1195_v14 = vadd.f32 %v1194_v55, %v1069_v10  ;;  %2814 = vmatpush3.bf16.msra.mxu1 %v3080_v11  ;;  %2836 = vmatpush3.bf16.msra.mxu0 %v3081_v12  ;;  %v1314_v4 = vrot.slane %v3613_v53, %v1313_v63  ;;  %v3111_v10 = vld [vmem:[%s3928_s3 + $0x238] sm:$0xff]   ;;  %v3123_v12 = vld [vmem:[%s3930_s5 + $0x8] sm:$0xff]  }
 0x142   : > { %2108 = vmatprep.mubr.bf16.mxu1 %v1350_v17  ;;  %2148 = vmatprep.mubr.bf16.mxu0 %v1352_v18  ;;  %v3114_v17 = vld [vmem:[%s3928_s3 + $0x268] sm:$0xff]   ;;  %v2197_v18 = vld [vmem:[%s452_s25] sm:$0x1]  ;;  %s3148_s25 = sshll.u32 %s3226_s24, 4  ;;  %s3149_s25 = int_to_ptr.vmem [resolvable:$false] %s3148_s25 }
 0x143   : > { %v1184_v19 = vadd.f32 %v1183_v13, %v1182_v5  ;;  %v1196_v47 = vrot.slane %v1195_v14, 4  ;;  %2815 = vmatprep.subr.bf16.mxu1 %v3082_v15  ;;  %2837 = vmatprep.subr.bf16.mxu0 %v3083_v16  ;;  %v1322_v5 = vrot.slane %v3613_v53, %v1321_v0  ;;  %v1349_v48 = vpack.c.bf16 %v1314_v4, %v1314_v4  ;;  %v3112_v53 = vld [vmem:[%s3928_s3 + $0x270] sm:$0xff]   ;;  %v3126_v16 = vld [vmem:[%s3930_s5] sm:$0xff]   ;;  %v3140_v4 = vld [vmem:[%s3935_s10 + $0x18] sm:$0xff]   ;;  %s3150_s23 = scalar_lea.vmem %s3149_s25, 32  ;;  %p3151_p1 = scmp.lt.s32.totalorder %s3881_s14, %s3149_s25 }
 0x144   : > { %p3152_p2 = scmp.lt.s32.totalorder %s3150_s23, %s3144_s27 }
 0x145   : > { %v1185_v24 = vrot.slane %v1184_v19, 2  ;;  %v1197_v23 = vadd.f32 %v1196_v47, %v1195_v14  ;;  %2816 = vmatpush3.bf16.msra.mxu1 %v3084_v3  ;;  %2838 = vmatpush3.bf16.msra.mxu0 %v3085_v51  ;;  %v1351_v7 = vpack.c.bf16 %v1322_v5, %v1322_v5  ;;  %v3113_v14 = vld [vmem:[%s3928_s3 + $0x230] sm:$0xff]   ;;  %v3117_v47 = vld [vmem:[%s3928_s3 + $0x220] sm:$0xff]   ;;  %v3118_v3 = vld [vmem:[%s3928_s3 + $0x258] sm:$0xff]  }
 0x146   : > { %2817 = vmatprep.subr.bf16.mxu1 %v3086_v8  ;;  %2839 = vmatprep.subr.bf16.mxu0 %v3087_v22  ;;  %v3119_v51 = vld [vmem:[%s3928_s3 + $0x218] sm:$0xff]   ;;  %v3120_v8 = vld [vmem:[%s3928_s3 + $0x250] sm:$0xff]   ;;  %p3153_p3 = por %p3152_p2, %p3151_p1 }
 0x147   : > { %v1186_v25 = vadd.f32 %v1185_v24, %v1184_v19  ;;  %v1198_v58 = vrot.slane %v1197_v23, 2  ;;  %v3116_v19 = vld [vmem:[%s3928_s3 + $0x260] sm:$0xff]   ;;  %v3121_v22 = vld [vmem:[%s3928_s3 + $0x210] sm:$0xff]   ;;  %v3122_v24 = vld [vmem:[%s3928_s3 + $0x248] sm:$0xff]  }
 0x148   : > { %p3154_p5 = pnand %p3153_p3, %p3147_p0 }
 0x149   : > { %v1187_v29 = vrot.slane %v1186_v25, 1  ;;  %v1199_v30 = vadd.f32 %v1198_v58, %v1197_v23  ;;  %2818 = vmatpush3.bf16.msra.mxu1 %v3088_v26  ;;  %2840 = vmatpush3.bf16.msra.mxu0 %v3089_v20  ;;  %v3124_v23 = vld [vmem:[%s3928_s3 + $0x208] sm:$0xff]   ;;  %v3127_v58 = vld [vmem:[%s3928_s3 + $0x200] sm:$0xff]  }
 0x14a   : > { %2819 = vmatprep.subr.bf16.mxu1 %v3090_v27  ;;  %2841 = vmatprep.subr.bf16.mxu0 %v3091_v28  ;;  %v3128_v27 = vld [vmem:[%s3932_s7 + $0x38] sm:$0xff]  }
 0x14b   : > { %v1188_v31 = vadd.f32 %v1187_v29, %v1186_v25  ;;  %v1200_v32 = vrot.slane %v1199_v30, 1  ;;  %v3125_v25 = vld [vmem:[%s3928_s3 + $0x240] sm:$0xff]   ;;  %v3131_v28 = vld [vmem:[%s3933_s8 + $0x18] sm:$0xff]   ;;  %v3130_v29 = vld [vmem:[%s3932_s7 + $0x28] sm:$0xff]  }
 0x14d   : > { %v1201_v36 = vadd.f32 %v1200_v32, %v1199_v30  ;;  %2820 = vmatpush3.bf16.msra.mxu1 %v3092_v33  ;;  %2842 = vmatpush3.bf16.msra.mxu0 %v3093_v50  ;;  %v3135_v30 = vld [vmem:[%s3933_s8 + $0x8] sm:$0xff]   ;;  %v3134_v32 = vld [vmem:[%s3932_s7 + $0x18] sm:$0xff]   ;;  %v3136_v33 = vld [vmem:[%s3932_s7 + $0x10] sm:$0xff]  }
 0x14e   : > { %2821 = vmatprep.subr.bf16.mxu1 %v3094_v59  ;;  %2843 = vmatprep.subr.bf16.mxu0 %v3095_v35  ;;  %v3137_v50 = vld [vmem:[%s3933_s8] sm:$0xff]   ;;  %v3138_v59 = vld [vmem:[%s3932_s7 + $0x8] sm:$0xff]  }
 0x14f   : > { %v1261_v38 = vcombine.low %v1188_v31, %v1201_v36  ;;  %v3132_v31 = vld [vmem:[%s3932_s7 + $0x20] sm:$0xff]  }
 0x150   : > { %v3139_v35 = vld [vmem:[%s3932_s7] sm:$0xff]  }
 0x151   : > { %v1268_v44 = vrot.slane %v1261_v38, %v3599_v34  ;;  %2822 = vmatpush3.bf16.msra.mxu1 %v3096_v39  ;;  %2844 = vmatpush3.bf16.msra.mxu0 %v3097_v40 }
 0x152   : > { %2823 = vmatprep.subr.bf16.mxu1 %v3098_v41  ;;  %2845 = vmatprep.subr.bf16.mxu0 %v3099_v42 }
 0x153   : > { %v1275_v46 = vrot.slane %v1268_v44, %v3599_v34  ;;  %v3103_v34 = vld [vmem:[%s3928_s3 + $0x1c8] sm:$0xff]  }
 0x155   : > { %v1279_v55 = vadd.f32 %v1275_v46, %v1071_v45  ;;  %2824 = vmatpush3.bf16.msra.mxu1 %v3100_v49  ;;  %2846 = vmatpush3.bf16.msra.mxu0 %v3101_v52 }
 0x156   : > { %2825 = vmatprep.subr.bf16.mxu1 %v3102_v54  ;;  %2847 = vmatprep.subr.bf16.mxu0 %v3103_v34 }
 0x157   : > { %1285 = vst.msk [vmem:[#allocation2 + $0x8] sm:$0x3] %vm3564_vm1, %v1279_v55 }
 0x159   : > { %2826 = vmatpush3.bf16.msra.mxu1 %v3104_v56  ;;  %2848 = vmatpush3.bf16.msra.mxu0 %v3105_v57 }
 0x15a   : > { %2827 = vmatprep.subr.bf16.mxu1 %v3106_v62  ;;  %2849 = vmatprep.subr.bf16.mxu0 %v3107_v60  ;;  %v2202_v62 = vld [vmem:[%s3931_s6] sm:$0x1] }
 0x15d   : > { %2828 = vmatpush3.bf16.msra.mxu1 %v3108_v1  ;;  %2850 = vmatpush3.bf16.msra.mxu0 %v3109_v2 }
 0x15e   : > { %v1290_v9 = vld [vmem:[#allocation2 + $0x8] sm:$0x3]  ;;  %2857 = vmatprep.subr.bf16.mxu1 %v3110_v6  ;;  %2901 = vmatprep.subr.bf16.mxu0 %v3223_v61 }
 0x15f   : > { %v1292_v11 = vmul.f32 0.015625, %v1290_v9 }
 0x160   : > { %2109 = vmatmul.mubr.bf16.vlgmr.msra.gmra.mxu1 %v1349_v48  ;;  %2149 = vmatmul.mubr.bf16.vlgmr.msra.gmra.mxu0 %v1351_v7 }
 0x161   : > { %v1334_v13 = vrot.slane %v1292_v11, %v1301_v37  ;;  %2858 = vmatpush3.bf16.msra.mxu1 %v3111_v10  ;;  %2902 = vmatpush3.bf16.msra.mxu0 %v3123_v12  ;;  %v3115_v37 = vld [vmem:[%s3928_s3 + $0x228] sm:$0xff]   ;;  %v1330_v26 = vrot.slane %v1292_v11, %v1297_v43  ;;  %v3133_v43 = vld [vmem:[%s3933_s8 + $0x10] sm:$0xff]   ;;  %v1515_v10 = vld [vmem:[%s3929_s4] sm:$0x1] }
 0x162   : > { %2859 = vmatprep.subr.bf16.mxu1 %v3112_v53  ;;  %2903 = vmatprep.subr.bf16.mxu0 %v3223_v61 }
 0x163   : > { %v1354_v15 = vpack.c.bf16 %v1334_v13, %v1334_v13  ;;  %2905 = vmatprep.mubr.msk.bf16.mxu0 %vm3225_vm2, %v3223_v61  ;;  %v1353_v20 = vpack.c.bf16 %v1330_v26, %v1330_v26 }
 0x165   : > { %2188 = vmatprep.mubr.bf16.mxu1 %v1354_v15  ;;  %2860 = vmatpush3.bf16.msra.mxu1 %v3113_v14 }
 0x166   : > { %2904 = vmatpush3.bf16.msra.mxu0 %v3126_v16  ;;  %2861 = vmatprep.subr.bf16.mxu1 %v3114_v17 }
 0x167   : > { %2921 = vmatprep.subr.bf16.mxu0 %v3223_v61 }
 0x169   : > { %2906 = vmatmul.mubr.msk.bf16.vlgmr.msra.gmra.mxu0 %vm612_vm0, %v2197_v18  ;;  %2862 = vmatpush3.bf16.msra.mxu1 %v3115_v37 }
 0x16a   : > { %2937 = vmatprep.mubr.msk.bf16.mxu0 %vm3225_vm2, %v3223_v61  ;;  %2863 = vmatprep.subr.bf16.mxu1 %v3116_v19 }
 0x16b   : > { %2922 = vmatpush3.bf16.msra.mxu0 %v3128_v27 }
 0x16c   : > { %2923 = vmatprep.subr.bf16.mxu0 %v3223_v61 }
 0x16d   : > { %2864 = vmatpush3.bf16.msra.mxu1 %v3117_v47 }
 0x16e   : > { %2865 = vmatprep.subr.bf16.mxu1 %v3118_v3 }
 0x16f   : > { %2924 = vmatpush3.bf16.msra.mxu0 %v3129_v21 }
 0x170   : > { %2925 = vmatprep.subr.bf16.mxu0 %v3223_v61 }
 0x171   : > { %2866 = vmatpush3.bf16.msra.mxu1 %v3119_v51  ;;  %v3141_v51 = vld [vmem:[%s3935_s10 + $0x10] sm:$0xff]  }
 0x172   : > { %2867 = vmatprep.subr.bf16.mxu1 %v3120_v8  ;;  %v3142_v8 = vld [vmem:[%s3935_s10 + $0x8] sm:$0xff]  }
 0x173   : > { %2926 = vmatpush3.bf16.msra.mxu0 %v3130_v29 }
 0x174   : > { %2927 = vmatprep.subr.bf16.mxu0 %v3223_v61 }
 0x175   : > { %2868 = vmatpush3.bf16.msra.mxu1 %v3121_v22  ;;  %v3143_v22 = vld [vmem:[%s3935_s10] sm:$0xff]  }
 0x176   : > { %2869 = vmatprep.subr.bf16.mxu1 %v3122_v24 }
 0x177   : > { %2928 = vmatpush3.bf16.msra.mxu0 %v3132_v31  ;;  %v2453_v31 = vld [vmem:[%s3936_s11] sm:$0x1] }
 0x178   : > { %2929 = vmatprep.subr.bf16.mxu0 %v3223_v61 }
 0x179   : > { %2870 = vmatpush3.bf16.msra.mxu1 %v3124_v23 }
 0x17a   : > { %2871 = vmatprep.subr.bf16.mxu1 %v3125_v25 }
 0x17b   : > { %2930 = vmatpush3.bf16.msra.mxu0 %v3134_v32 }
 0x17c   : > { %2931 = vmatprep.subr.bf16.mxu0 %v3223_v61 }
 0x17d   : > { %2872 = vmatpush3.bf16.msra.mxu1 %v3127_v58 }
 0x17e   : > { %2909 = vmatprep.subr.bf16.mxu1 %v3223_v61 }
 0x17f   : > { %2932 = vmatpush3.bf16.msra.mxu0 %v3136_v33 }
 0x180   : > { %2189 = vmatmul.mubr.bf16.vlgmr.msra.gmra.mxu1 %v1353_v20  ;;  %2933 = vmatprep.subr.bf16.mxu0 %v3223_v61  ;;  %v2441_v20 = vld [vmem:[%s3934_s9] sm:$0x1] }
 0x181   : > { %2917 = vmatprep.mubr.msk.bf16.mxu1 %vm3225_vm2, %v3223_v61  ;;  %2910 = vmatpush3.bf16.msra.mxu1 %v3131_v28 }
 0x182   : > { %2911 = vmatprep.subr.bf16.mxu1 %v3223_v61 }
 0x183   : > { %2934 = vmatpush3.bf16.msra.mxu0 %v3138_v59 }
 0x184   : > { %2935 = vmatprep.subr.bf16.mxu0 %v3223_v61 }
 0x185   : > { %2912 = vmatpush3.bf16.msra.mxu1 %v3133_v43 }
 0x186   : > { %2913 = vmatprep.subr.bf16.mxu1 %v3223_v61 }
 0x187   : > { %2936 = vmatpush3.bf16.msra.mxu0 %v3139_v35 }
 0x189   : > { %2914 = vmatpush3.bf16.msra.mxu1 %v3135_v30 }
 0x18a   : > { %2915 = vmatprep.subr.bf16.mxu1 %v3223_v61 }
 0x18d   : > { %2916 = vmatpush3.bf16.msra.mxu1 %v3137_v50 }
 0x18e   : > { %2941 = vmatprep.subr.bf16.mxu1 %v3223_v61 }
 0x200   : > { %v2785_v36 = vpop.f32.mrf.mxu1  ;;  %v2807_v38 = vpop.f32.mrf.mxu0 }
 0x202   : > { %v2786_v39 = vpop.f32.mrf.mxu1  ;;  %v2808_v40 = vpop.f32.mrf.mxu0 }
 0x203   : > { %v2787_v9 = vadd.f32 %v2786_v39, %v2785_v36  ;;  %v2809_v12 = vadd.f32 %v2808_v40, %v2807_v38 }
 0x204   : > { %v2788_v41 = vpop.f32.mrf.mxu1  ;;  %v2810_v42 = vpop.f32.mrf.mxu0 }
 0x205   : > { %v2031_v11 = vadd.f32 %v2787_v9, %v1515_v10 }
 0x206   : > { %v2789_v44 = vpop.f32.mrf.mxu1  ;;  %v2811_v45 = vpop.f32.mrf.mxu0 }
 0x207   : > { %v2071_v7 = vadd.f32 %v2809_v12, %v2031_v11 }
 0x220   : > { %v2829_v46 = vpop.f32.mrf.mxu1  ;;  %v2851_v49 = vpop.f32.mrf.mxu0 }
 0x222   : > { %v2830_v52 = vpop.f32.mrf.mxu1  ;;  %v2852_v54 = vpop.f32.mrf.mxu0 }
 0x223   : > { %v2831_v48 = vadd.f32 %v2830_v52, %v2829_v46  ;;  %v2853_v14 = vadd.f32 %v2852_v54, %v2851_v49 }
 0x224   : > { %v2832_v34 = vpop.f32.mrf.mxu1  ;;  %v2854_v55 = vpop.f32.mrf.mxu0 }
 0x225   : > { %v2111_v53 = vadd.f32 %v2831_v48, %v2071_v7 }
 0x226   : > { %v2833_v56 = vpop.f32.mrf.mxu1  ;;  %v2855_v57 = vpop.f32.mrf.mxu0 }
 0x227   : > { %v2151_v16 = vadd.f32 %v2853_v14, %v2111_v53 }
 0x229   : > { %v2252_v60 = vpop.f32.mrf.mxu0 }
 0x22a   : > { %v2253_v63 = vadd.f32 %v2252_v60, %v2202_v62 }
 0x22b   : > { %v2907_v0 = vpop.f32.mrf.mxu0 }
 0x22c   : > { %v2258_v1 = vmax.f32 %v2253_v63, 0.0 }
 0x22d   : > { %v2255_v2 = vpop.f32.mrf.mxu0 }
 0x22e   : > { %v2276_v5 = vpack.c.bf16 %v2258_v1, %v2258_v1 }
 0x22f   : > { %v2908_v6 = vpop.f32.mrf.mxu0 }
 0x230   : > { %2918 = vmatmul.mubr.msk.bf16.vlgmr.msra.gmra.mxu1 %vm2309_vm3, %v2276_v5 }
 0x231   : > { %2942 = vmatpush3.bf16.msra.mxu1 %v3140_v4  ;;  %2949 = vmatprep.mubr.msk.bf16.mxu1 %vm3225_vm2, %v3223_v61 }
 0x232   : > { %2943 = vmatprep.subr.bf16.mxu1 %v3223_v61 }
 0x235   : > { %2944 = vmatpush3.bf16.msra.mxu1 %v3141_v51 }
 0x236   : > { %2945 = vmatprep.subr.bf16.mxu1 %v3223_v61 }
 0x239   : > { %2946 = vmatpush3.bf16.msra.mxu1 %v3142_v8 }
 0x23a   : > { %2947 = vmatprep.subr.bf16.mxu1 %v3223_v61 }
 0x23d   : > { %2948 = vmatpush3.bf16.msra.mxu1 %v3143_v22 }
 0x240   : > { %v2873_v13 = vpop.f32.mrf.mxu1 }
 0x242   : > { %v2874_v15 = vpop.f32.mrf.mxu1 }
 0x243   : > { %v2875_v17 = vadd.f32 %v2874_v15, %v2873_v13 }
 0x244   : > { %v2876_v37 = vpop.f32.mrf.mxu1 }
 0x245   : > { %v2191_v18 = vadd.f32 %v2875_v17, %v2151_v16 }
 0x246   : > { %v2877_v19 = vpop.f32.mrf.mxu1 }
 0x247   : > { %v2196_v47 = vmax.f32 %v2191_v18, 0.0 }
 0x249   : > { %v2259_v3 = vpack.c.bf16 %v2196_v47, %v2196_v47 }
 0x24b   : > { %2938 = vmatmul.mubr.bf16.vlgmr.msra.gmra.mxu0 %v2259_v3 }
 0x2f0   : > { %v2347_v24 = vpop.f32.mrf.mxu1 }
 0x2f2   : > { %v2919_v23 = vpop.f32.mrf.mxu1 }
 0x2f4   : > { %v2350_v25 = vpop.f32.mrf.mxu1 }
 0x2f6   : > { %v2920_v58 = vpop.f32.mrf.mxu1 }
 0x30b   : > { %v2435_v26 = vpop.f32.mrf.mxu0 }
 0x30c   : > { %v2436_v27 = vadd.f32 %v2435_v26, %v2347_v24 }
 0x30d   : > { %v2939_v28 = vpop.f32.mrf.mxu0 }
 0x30e   : > { %v2442_v21 = vadd.f32 %v2441_v20, %v2436_v27 }
 0x30f   : > { %v2438_v61 = vpop.f32.mrf.mxu0 }
 0x310   : > { %v2443_v43 = vmax.f32 %v2442_v21, 0.0 }
 0x311   : > { %v2940_v29 = vpop.f32.mrf.mxu0 }
 0x312   : > { %v2444_v30 = vpack.c.bf16 %v2443_v43, %v2443_v43 }
 0x314   : > { %2950 = vmatmul.mubr.msk.bf16.vlgmr.msra.gmra.mxu1 %vm2309_vm3, %v2444_v30 }
 0x3d4   : > { %v2515_v32 = vpop.f32.mrf.mxu1 }
 0x3d5   : > { %v2516_v33 = vadd.f32 %v2515_v32, %v2453_v31 }
 0x3d6   : > { %v2951_v50 = vpop.f32.mrf.mxu1 }
 0x3d7   : > { %2521 = vst [vmem:[%s439_s17] sm:$0x1] %v2516_v33 }
 0x3d8   : > { %v2518_v59 = vpop.f32.mrf.mxu1 }
 0x3d9   : > { %3157 = shalt.err (!%p3154_p5)
}
 0x3da   : > { %s3158_s16 = scalar_lea.hbm %s3879_s18, 16  ;;  %s3162_s17 = scalar_lea.hbm %s3937_s12, 32 }
 0x3db   : > { %p3159_p6 = scmp.ne.s32.totalorder %s3879_s18, %s3158_s16  ;;  %p3163_p10 = scmp.lt.s32.totalorder %s3879_s18, %s3937_s12 }
 0x3dc   : > { %p3164_p11 = scmp.lt.s32.totalorder %s3162_s17, %s3158_s16 }
 0x3dd   : > { %p3160_p7 = pnand %p3159_p6, %p3332_p4 }
 0x3de   : > { %p3165_p12 = por %p3164_p11, %p3163_p10 }
 0x3df   : > { %p3161_p9 = pneg %p3160_p7 }
 0x3e1   : > { %p3166_p13 = pnand %p3165_p12, %p3161_p9 }
 0x3e3   : > { %3169 = shalt.err (!%p3166_p13)
}
 0x3e4   : > { %2953 = dma.vmem_to_hbm [thread:$0]  (%p3332_p4), %s3881_s14, 16, %s3879_s18, %s2523_s20   ;;  %v2952_v35 = vpop.f32.mrf.mxu1 }
 0x3e5 PF: > { %p2959_p0 = scmp.ge.s32.totalorder %s3220_s26, 2  ;;  %s2547_s27 = sand.u32 1, %s3200_s21  }
 0x3e6   : > { %s2548_s24 = scalar_lea.sflag [#allocation4], %s2547_s27 }
 0x3e7   : > { %p2956_p1 = pnand %p2959_p0, %p3339_p8 }
 0x3e9   : > { %p2957_p2 = pneg %p2956_p1 }
 0x3eb   : > { %3195 = dma.done.wait (%p2957_p2), %s2548_s24, 16  }
 0x3ec   : > { %3197 = vsyncadd (%p2957_p2), %s2548_s24, 4294967280  ;;  %s25_s26 = sadd.s32 1, %s3220_s26   ;;  %s3949_s13 = sld [smem:[#allocation6_spill]] }
 0x3ed   : > { %p22_p3 = scmp.ge.s32.totalorder %s25_s26, 4   ;;  %s3950_s23 = sld [smem:[#allocation9_spill]] }
 0x3ee   : > { %s3951_s24 = sld [smem:[#allocation7_spill]]  ;;  %s3953_s21 = smov %s3204_s22 }
 0x3ef   : > { %s3952_s25 = sld [smem:[#allocation8_spill]]  ;;  %24 = sbr.rel (!%p22_p3) target bundleno = 4 (0x4), region = 114 }
 0x3f2   : > { %s3954_s22 = smov %s3949_s13 }
 0x3f4   :  { %2552 = vsyncpa [#allocation4], 1 }
 0x3f5   :  { %2554 = vsyncpa [#allocation4 + $0x1], 1 }

</bundles_post_ra>
